<compile_context>
chip_gen: v5e
topology: v5e:2x2
jax: 0.10.0
libtpu: 0.0.40
codegen_flags: <defaults>
</compile_context>

<pallas_src>
import functools
import math

import jax
import jax.numpy as jnp
from jax import lax
from jax.experimental import pallas as pl
from jax.experimental.pallas import tpu as pltpu


# ----------------------------- config (small, synthetic) -----------------------------
B = 2            # batch
T = 8            # block_size (sequence length)
C = 32           # n_embed
N_HEAD = 4
HEAD_SIZE = C // N_HEAD
HIDDEN = 64      # config.hidden_size (ffwd hidden)
LN_EPS = 1e-5


def _gelu_exact(x):
    # PyTorch nn.GELU() default: 0.5 * x * (1 + erf(x / sqrt(2)))
    return 0.5 * x * (1.0 + lax.erf(x * (1.0 / math.sqrt(2.0))))


# --------------------------------- the Pallas kernel ---------------------------------
def block_kernel(x_ref, pde_ref, negmask_ref, wa_ref, wp_ref, w2e_ref, pslab_ref,
                 out_ref, *, batch, seq, n_head, hidden):
    bt, c = x_ref.shape                 # (B*T, C)
    nhc = n_head * c                    # lane-packed head axis width (128 here)
    two_c = 2 * c

    # --- unpack coalesced parameter slabs (static slices; one DMA per slab) -----------
    w1kq  = wa_ref[:, 0:2 * nhc]                                   # (C, 2*NH*C)  tile-aligned
    valw  = wa_ref[:, 2 * nhc:2 * nhc + c]                         # (C, C)
    projw = wa_ref[:, 2 * nhc + c:2 * nhc + 2 * c]                 # (C, C)
    ffw1  = wa_ref[:, 2 * nhc + 2 * c:2 * nhc + 2 * c + hidden]    # (C, HIDDEN)
    w1p   = wp_ref[0:two_c, 0:nhc]                                 # (2C, NH*C)   tile-aligned
    ffw2  = wp_ref[0:hidden, nhc:nhc + c]                          # (HIDDEN, C)

    b1    = pslab_ref[0:1, :]                                      # (1, NH*C)
    b2e   = pslab_ref[1:2, 0:c]     # (1, C)  per-head score bias, scale folded, HS-replicated
    valb  = pslab_ref[2:3, 0:c]
    projb = pslab_ref[3:4, 0:c]
    lng   = pslab_ref[4:5, 0:c]
    lnb   = pslab_ref[5:6, 0:c]

    x = x_ref[...]                      # (B*T, C) — batch folded into rows

    # --- NN attention scores: all heads packed into the 128-lane axis ----------------
    # One lane-dense matmul produces the k-part (indexed by j) and q-part (indexed by i)
    # of every head: (B*T, C) @ (C, 2*NH*C) -> (B*T, 2*NH*C).
    kq = jnp.dot(x, w1kq, preferred_element_type=jnp.float32)
    kpart = kq[:, :nhc].reshape(batch, seq, nhc)        # (B, T, NH*C)  -> index j
    qpart = kq[:, nhc:].reshape(batch, seq, nhc)        # (B, T, NH*C)  -> index i

    # Batch-invariant positional part — computed exactly once, bias folded in.
    ppart = (jnp.dot(pde_ref[...], w1p, preferred_element_type=jnp.float32)
             + b1).reshape(seq, seq, nhc)               # (T, T, NH*C)

    # hdd[b, i, j, :] = W1k @ x[b, j] + W1q @ x[b, i] + W1 @ pde[i, j] + b1   (heads in lanes)
    hdd = kpart[:, None, :, :] + qpart[:, :, None, :] + ppart[None, :, :, :]   # (B, T, T, NH*C)
    hact = _gelu_exact(hdd)

    # --- per-head logits on the MXU: block-diag w2 (scale + head_size replication folded) ---
    hact_flat = hact.reshape(batch * seq * seq, nhc)    # (B*T*T, NH*C) — free leading merge
    logits = (jnp.dot(hact_flat, w2e_ref[...], preferred_element_type=jnp.float32)
              + b2e + negmask_ref[...])                 # additive causal mask, (B*T*T, C)
    logits = logits.reshape(batch, seq, seq, c)         # (B, Ti, Tj, C) — free leading split

    # --- single masked softmax over j for all (batch, head, query) rows at once ------
    m = jnp.max(logits, axis=2, keepdims=True)
    p = jnp.exp(logits - m)                             # masked entries underflow to exactly 0
    denom = jnp.sum(p, axis=2, keepdims=True)
    wei = p * pl.reciprocal(denom, approx=True)         # (B, Ti, Tj, C)
    # TODO(synk): dropout on attention weights omitted (eval mode / identity)

    # --- values for all heads (lane-packed) and wei @ v without per-head slices/concat ---
    v_all = jnp.dot(x, valw, preferred_element_type=jnp.float32) + valb     # (B*T, C)
    v3 = v_all.reshape(batch, seq, c)                   # (B, Tj, C)
    head_cat = jnp.sum(wei * v3[:, None, :, :], axis=2).reshape(bt, c)      # (B*T, C)

    # --- fused output projection, residual 1 -----------------------------------------
    sa = jnp.dot(head_cat, projw, preferred_element_type=jnp.float32) + projb
    x1 = x + sa

    # --- LayerNorm (ln2) --------------------------------------------------------------
    mu = jnp.mean(x1, axis=-1, keepdims=True)
    var = jnp.mean((x1 - mu) ** 2, axis=-1, keepdims=True)
    xn = (x1 - mu) * lax.rsqrt(var + LN_EPS) * lng + lnb

    # --- GeluFeedForward (no bias): Linear -> GELU -> Linear; residual 2 ---------------
    h1 = _gelu_exact(jnp.dot(xn, ffw1, preferred_element_type=jnp.float32))
    ff = jnp.dot(h1, ffw2, preferred_element_type=jnp.float32)

    out_ref[...] = (x1 + ff).astype(out_ref.dtype)


# --------------------------------- wrapper ---------------------------------
def _pack_params(p):
    nh, two_c, c = p["att_w1"].shape
    hs = p["val_w"].shape[2]
    hidden = p["ff_w1"].shape[1]
    scale = c ** (-0.5)

    # Score-net weights, heads packed along lanes.
    w1k = jnp.transpose(p["att_w1"][:, :c, :], (1, 0, 2)).reshape(c, nh * c)     # k-part
    w1q = jnp.transpose(p["att_w1"][:, c:, :], (1, 0, 2)).reshape(c, nh * c)     # q-part
    w1kq = jnp.concatenate([w1k, w1q], axis=1)                                   # (C, 2*NH*C)
    w1p = jnp.transpose(p["att_w1"], (1, 0, 2)).reshape(two_c, nh * c)           # (2C, NH*C)
    b1 = p["att_b1"].reshape(1, nh * c)                                          # (1, NH*C)

    # Block-diagonal w2 with C**-0.5 folded in; each head's column replicated head_size times
    # so the logits matmul output is already in the (head, head_size) lane packing.
    eye = jnp.eye(nh, dtype=jnp.float32)
    w2e = (p["att_w2"][:, :, None, None] * eye[:, None, :, None])                # (NH, C, NH, 1)
    w2e = jnp.broadcast_to(w2e, (nh, c, nh, hs)).reshape(nh * c, nh * hs) * scale
    b2e = jnp.broadcast_to(p["att_b2"], (nh, hs)).reshape(1, nh * hs) * scale    # (1, C)

    # Value weights fused across heads.
    valw = jnp.transpose(p["val_w"], (1, 0, 2)).reshape(c, nh * hs)              # (C, C)
    valb = p["val_b"].reshape(1, nh * hs)                                        # (1, C)

    # Coalesced weight slabs (fewer DMA setups; largest operands stay lane-tile aligned).
    wa_slab = jnp.concatenate([w1kq, valw, p["proj_w"], p["ff_w1"]], axis=1)     # (C, 2NHC+2C+H)
    rows_wp = max(two_c, hidden)
    w1p_p = jnp.pad(w1p, ((0, rows_wp - two_c), (0, 0)))
    ffw2_p = jnp.pad(p["ff_w2"], ((0, rows_wp - hidden), (0, 0)))
    wp_slab = jnp.concatenate([w1p_p, ffw2_p], axis=1)                           # (rows, NHC+C)

    def row(v, width=nh * c):
        v = v.reshape(1, -1)
        return jnp.pad(v, ((0, 0), (0, width - v.shape[1])))

    pslab = jnp.concatenate(
        [row(b1), row(b2e), row(valb), row(p["proj_b"]), row(p["ln_g"]), row(p["ln_b"]),
         jnp.zeros((2, nh * c), jnp.float32)], axis=0)                           # (8, NH*C)

    return wa_slab, wp_slab, w2e, pslab


def block_forward(x, st_pos_emb, pos_dist_emb, params):
    b, t, c = x.shape
    nh = params["att_w1"].shape[0]
    hidden = params["ff_w1"].shape[1]
    wa_slab, wp_slab, w2e, pslab = _pack_params(params)

    # Fold batch into rows (single kernel step); pre-flatten pos_dist_emb wrapper-side.
    x_flat = x.reshape(b * t, c)
    pde_flat = pos_dist_emb.reshape(t * t, 2 * c)

    # Additive causal mask, one value per (b, i, j) row of the flattened score tensor.
    tri = jnp.tril(jnp.ones((t, t), dtype=bool))
    negmask = jnp.where(tri, 0.0, -1e30).astype(jnp.float32)
    negmask = jnp.broadcast_to(negmask[None], (b, t, t)).reshape(b * t * t, 1)

    vmem = pl.BlockSpec(memory_space=pltpu.MemorySpace.VMEM)

    out = pl.pallas_call(
        functools.partial(block_kernel, batch=b, seq=t, n_head=nh, hidden=hidden),
        out_shape=jax.ShapeDtypeStruct((b * t, c), x.dtype),
        in_specs=[vmem] * 7,
        out_specs=vmem,
    )(x_flat, pde_flat, negmask, wa_slab, wp_slab, w2e, pslab)

    # Block.forward returns (x, st_pos_emb)
    return out.reshape(b, t, c), st_pos_emb


# --------------------------------- pure-JAX reference ---------------------------------
def block_reference(x, pos_dist_emb, p):
    b, t, c = x.shape
    nh = p["att_w1"].shape[0]

    x_tmp = jnp.broadcast_to(x[:, None, :, :], (b, t, t, c))   # unsqueeze(1).repeat(1,t,1,1)
    k = x_tmp
    q = jnp.transpose(x_tmp, (0, 2, 1, 3))
    a2_pre = jnp.concatenate([k, q], axis=-1) + pos_dist_emb[None]   # (b,t,t,2c)

    heads = []
    mask = jnp.tril(jnp.ones((t, t), dtype=bool))
    for h in range(nh):
        hdd = jnp.einsum("btsd,de->btse", a2_pre, p["att_w1"][h]) + p["att_b1"][h]
        hact = _gelu_exact(hdd)
        logits = jnp.einsum("btse,e->bts", hact, p["att_w2"][h]) + p["att_b2"][h, 0]
        wei = logits * c ** (-0.5)
        wei = jnp.where(mask, wei, -jnp.inf)
        wei = jax.nn.softmax(wei, axis=-1)
        v = x @ p["val_w"][h] + p["val_b"][h]
        heads.append(wei @ v)
    sa = jnp.concatenate(heads, axis=-1) @ p["proj_w"] + p["proj_b"][0]
    x1 = x + sa

    mu = jnp.mean(x1, axis=-1, keepdims=True)
    var = jnp.mean((x1 - mu) ** 2, axis=-1, keepdims=True)
    xn = (x1 - mu) / jnp.sqrt(var + LN_EPS) * p["ln_g"][0] + p["ln_b"][0]
    ff = _gelu_exact(xn @ p["ff_w1"]) @ p["ff_w2"]
    return x1 + ff


# --------------------------------- main ---------------------------------
def make_params(key):
    ks = jax.random.split(key, 12)
    n = lambda k, s, sc=0.05: (sc * jax.random.normal(k, s)).astype(jnp.float32)
    return {
        # NNAttentionHead.att: GeluFeedForward(2C -> C -> 1, bias=True), stacked over heads
        "att_w1": n(ks[0], (N_HEAD, 2 * C, C)),
        "att_b1": n(ks[1], (N_HEAD, C)),
        "att_w2": n(ks[2], (N_HEAD, C)),
        "att_b2": n(ks[3], (N_HEAD, 1)),
        # NNAttentionHead.value: Linear(C -> head_size, bias=True), stacked over heads
        "val_w": n(ks[4], (N_HEAD, C, HEAD_SIZE)),
        "val_b": n(ks[5], (N_HEAD, HEAD_SIZE)),
        # MultiHeadAttention.proj: Linear(C -> C)
        "proj_w": n(ks[6], (C, C)),
        "proj_b": n(ks[7], (1, C)),
        # Block.ln2
        "ln_g": jnp.ones((1, C), jnp.float32),
        "ln_b": jnp.zeros((1, C), jnp.float32),
        # Block.ffwd: GeluFeedForward(C -> HIDDEN -> C, bias=False)
        "ff_w1": n(ks[8], (C, HIDDEN)),
        "ff_w2": n(ks[9], (HIDDEN, C)),
    }


if __name__ == "__main__":
    key = jax.random.PRNGKey(0)
    kx, kp, ks, kd = jax.random.split(key, 4)

    x = jax.random.normal(kx, (B, T, C), jnp.float32)
    st_pos_emb = jax.random.normal(ks, (T, C), jnp.float32)          # passed through unchanged
    pos_dist_emb = 0.1 * jax.random.normal(kd, (T, T, 2 * C), jnp.float32)
    params = make_params(kp)

    out, st_out = block_forward(x, st_pos_emb, pos_dist_emb, params)
    out = jax.block_until_ready(out)

    with jax.default_matmul_precision("highest"):
        ref = jax.block_until_ready(block_reference(x, pos_dist_emb, params))

    err = float(jnp.max(jnp.abs(out - ref)))
    assert out.shape == (B, T, C)
    assert st_out.shape == st_pos_emb.shape
    assert jnp.all(jnp.isfinite(out)), "non-finite output"
    assert err < 5e-3, f"mismatch vs reference: {err}"
    print("KERNEL_OK")
</pallas_src>

<mosaic_0001>
module attributes {stable_mosaic.version = 11 : i64} {
  func.func @block_kernel(%arg0: memref<16x32xf32, #tpu.memory_space<vmem>>, %arg1: memref<64x64xf32, #tpu.memory_space<vmem>>, %arg2: memref<128x1xf32, #tpu.memory_space<vmem>>, %arg3: memref<32x384xf32, #tpu.memory_space<vmem>>, %arg4: memref<64x160xf32, #tpu.memory_space<vmem>>, %arg5: memref<128x32xf32, #tpu.memory_space<vmem>>, %arg6: memref<8x128xf32, #tpu.memory_space<vmem>>, %arg7: memref<16x32xf32, #tpu.memory_space<vmem>>) attributes {dimension_semantics = [], scalar_prefetch = 0 : i64, scratch_operands = 0 : i64, tpu.core_type = #tpu.core_type<tc>} {
    %c0 = arith.constant 0 : index
    %c0_0 = arith.constant 0 : index
    %0 = vector.load %arg3[%c0, %c0_0] : memref<32x384xf32, #tpu.memory_space<vmem>>, vector<32x256xf32>
    %c0_1 = arith.constant 0 : index
    %c256 = arith.constant 256 : index
    %1 = vector.load %arg3[%c0_1, %c256] : memref<32x384xf32, #tpu.memory_space<vmem>>, vector<32x32xf32>
    %c0_2 = arith.constant 0 : index
    %c288 = arith.constant 288 : index
    %2 = vector.load %arg3[%c0_2, %c288] : memref<32x384xf32, #tpu.memory_space<vmem>>, vector<32x32xf32>
    %c0_3 = arith.constant 0 : index
    %c320 = arith.constant 320 : index
    %3 = vector.load %arg3[%c0_3, %c320] : memref<32x384xf32, #tpu.memory_space<vmem>>, vector<32x64xf32>
    %c0_4 = arith.constant 0 : index
    %c0_5 = arith.constant 0 : index
    %4 = vector.load %arg4[%c0_4, %c0_5] : memref<64x160xf32, #tpu.memory_space<vmem>>, vector<64x128xf32>
    %c0_6 = arith.constant 0 : index
    %c128 = arith.constant 128 : index
    %5 = vector.load %arg4[%c0_6, %c128] : memref<64x160xf32, #tpu.memory_space<vmem>>, vector<64x32xf32>
    %c0_7 = arith.constant 0 : index
    %c0_8 = arith.constant 0 : index
    %6 = vector.load %arg6[%c0_7, %c0_8] : memref<8x128xf32, #tpu.memory_space<vmem>>, vector<1x128xf32>
    %c1 = arith.constant 1 : index
    %c0_9 = arith.constant 0 : index
    %7 = vector.load %arg6[%c1, %c0_9] : memref<8x128xf32, #tpu.memory_space<vmem>>, vector<1x32xf32>
    %c2 = arith.constant 2 : index
    %c0_10 = arith.constant 0 : index
    %8 = vector.load %arg6[%c2, %c0_10] : memref<8x128xf32, #tpu.memory_space<vmem>>, vector<1x32xf32>
    %c3 = arith.constant 3 : index
    %c0_11 = arith.constant 0 : index
    %9 = vector.load %arg6[%c3, %c0_11] : memref<8x128xf32, #tpu.memory_space<vmem>>, vector<1x32xf32>
    %c4 = arith.constant 4 : index
    %c0_12 = arith.constant 0 : index
    %10 = vector.load %arg6[%c4, %c0_12] : memref<8x128xf32, #tpu.memory_space<vmem>>, vector<1x32xf32>
    %c5 = arith.constant 5 : index
    %c0_13 = arith.constant 0 : index
    %11 = vector.load %arg6[%c5, %c0_13] : memref<8x128xf32, #tpu.memory_space<vmem>>, vector<1x32xf32>
    %c0_14 = arith.constant 0 : index
    %c0_15 = arith.constant 0 : index
    %12 = vector.load %arg0[%c0_14, %c0_15] : memref<16x32xf32, #tpu.memory_space<vmem>>, vector<16x32xf32>
    %cst = arith.constant dense<0.000000e+00> : vector<16x256xf32>
    %13 = tpu.matmul %12, %0, %cst {dimension_numbers = #tpu.dot_dimension_numbers<[1], [0], [0], [1], [0, 0, 1, 1], [], []>} : vector<16x32xf32>, vector<32x256xf32>, vector<16x256xf32> -> vector<16x256xf32>
    %14 = vector.extract_strided_slice %13 {offsets = [0, 0], sizes = [16, 128], strides = [1, 1]} : vector<16x256xf32> to vector<16x128xf32>
    %15 = vector.shape_cast %14 : vector<16x128xf32> to vector<2x8x128xf32>
    %16 = vector.extract_strided_slice %13 {offsets = [0, 128], sizes = [16, 128], strides = [1, 1]} : vector<16x256xf32> to vector<16x128xf32>
    %17 = vector.shape_cast %16 : vector<16x128xf32> to vector<2x8x128xf32>
    %c0_16 = arith.constant 0 : index
    %c0_17 = arith.constant 0 : index
    %18 = vector.load %arg1[%c0_16, %c0_17] : memref<64x64xf32, #tpu.memory_space<vmem>>, vector<64x64xf32>
    %cst_18 = arith.constant dense<0.000000e+00> : vector<64x128xf32>
    %19 = tpu.matmul %18, %4, %cst_18 {dimension_numbers = #tpu.dot_dimension_numbers<[1], [0], [0], [1], [0, 0, 1, 1], [], []>} : vector<64x64xf32>, vector<64x128xf32>, vector<64x128xf32> -> vector<64x128xf32>
    %20 = vector.broadcast %6 : vector<1x128xf32> to vector<64x128xf32>
    %21 = arith.addf %19, %20 : vector<64x128xf32>
    %22 = vector.shape_cast %21 : vector<64x128xf32> to vector<8x8x128xf32>
    %23 = vector.shape_cast %15 : vector<2x8x128xf32> to vector<2x1x8x128xf32>
    %24 = vector.shape_cast %17 : vector<2x8x128xf32> to vector<2x8x1x128xf32>
    %25 = vector.broadcast %23 : vector<2x1x8x128xf32> to vector<2x8x8x128xf32>
    %26 = vector.broadcast %24 : vector<2x8x1x128xf32> to vector<2x8x8x128xf32>
    %27 = arith.addf %25, %26 : vector<2x8x8x128xf32>
    %28 = vector.shape_cast %22 : vector<8x8x128xf32> to vector<1x8x8x128xf32>
    %29 = vector.broadcast %28 : vector<1x8x8x128xf32> to vector<2x8x8x128xf32>
    %30 = arith.addf %27, %29 : vector<2x8x8x128xf32>
    %cst_19 = arith.constant 5.000000e-01 : f32
    %31 = vector.broadcast %cst_19 : f32 to vector<2x8x8x128xf32>
    %32 = arith.mulf %31, %30 : vector<2x8x8x128xf32>
    %cst_20 = arith.constant 0.707106769 : f32
    %33 = vector.broadcast %cst_20 : f32 to vector<2x8x8x128xf32>
    %34 = arith.mulf %30, %33 : vector<2x8x8x128xf32>
    %35 = math.erf %34 : vector<2x8x8x128xf32>
    %cst_21 = arith.constant 1.000000e+00 : f32
    %36 = vector.broadcast %cst_21 : f32 to vector<2x8x8x128xf32>
    %37 = arith.addf %36, %35 : vector<2x8x8x128xf32>
    %38 = arith.mulf %32, %37 : vector<2x8x8x128xf32>
    %39 = vector.shape_cast %38 : vector<2x8x8x128xf32> to vector<128x128xf32>
    %c0_22 = arith.constant 0 : index
    %c0_23 = arith.constant 0 : index
    %40 = vector.load %arg5[%c0_22, %c0_23] : memref<128x32xf32, #tpu.memory_space<vmem>>, vector<128x32xf32>
    %cst_24 = arith.constant dense<0.000000e+00> : vector<128x32xf32>
    %41 = tpu.matmul %39, %40, %cst_24 {dimension_numbers = #tpu.dot_dimension_numbers<[1], [0], [0], [1], [0, 0, 1, 1], [], []>} : vector<128x128xf32>, vector<128x32xf32>, vector<128x32xf32> -> vector<128x32xf32>
    %42 = vector.broadcast %7 : vector<1x32xf32> to vector<128x32xf32>
    %43 = arith.addf %41, %42 : vector<128x32xf32>
    %c0_25 = arith.constant 0 : index
    %c0_26 = arith.constant 0 : index
    %44 = vector.load %arg2[%c0_25, %c0_26] : memref<128x1xf32, #tpu.memory_space<vmem>>, vector<128x1xf32>
    %45 = vector.broadcast %44 : vector<128x1xf32> to vector<128x32xf32>
    %46 = arith.addf %43, %45 : vector<128x32xf32>
    %47 = vector.shape_cast %46 : vector<128x32xf32> to vector<2x8x8x32xf32>
    %cst_27 = arith.constant dense<0xFF800000> : vector<2x8x32xf32>
    %48 = vector.multi_reduction <maximumf>, %47, %cst_27 [2] : vector<2x8x8x32xf32> to vector<2x8x32xf32>
    %49 = vector.shape_cast %48 : vector<2x8x32xf32> to vector<2x8x1x32xf32>
    %50 = vector.broadcast %49 : vector<2x8x1x32xf32> to vector<2x8x8x32xf32>
    %51 = arith.subf %47, %50 : vector<2x8x8x32xf32>
    %52 = math.exp %51 : vector<2x8x8x32xf32>
    %cst_28 = arith.constant dense<0.000000e+00> : vector<2x8x32xf32>
    %53 = vector.multi_reduction <add>, %52, %cst_28 [2] : vector<2x8x8x32xf32> to vector<2x8x32xf32>
    %54 = vector.shape_cast %53 : vector<2x8x32xf32> to vector<2x8x1x32xf32>
    %55 = tpu.reciprocal %54 {approx = true} : vector<2x8x1x32xf32> -> vector<2x8x1x32xf32>
    %56 = vector.broadcast %55 : vector<2x8x1x32xf32> to vector<2x8x8x32xf32>
    %57 = arith.mulf %52, %56 : vector<2x8x8x32xf32>
    %cst_29 = arith.constant dense<0.000000e+00> : vector<16x32xf32>
    %58 = tpu.matmul %12, %1, %cst_29 {dimension_numbers = #tpu.dot_dimension_numbers<[1], [0], [0], [1], [0, 0, 1, 1], [], []>} : vector<16x32xf32>, vector<32x32xf32>, vector<16x32xf32> -> vector<16x32xf32>
    %59 = vector.broadcast %8 : vector<1x32xf32> to vector<16x32xf32>
    %60 = arith.addf %58, %59 : vector<16x32xf32>
    %61 = vector.shape_cast %60 : vector<16x32xf32> to vector<2x8x32xf32>
    %62 = vector.shape_cast %61 : vector<2x8x32xf32> to vector<2x1x8x32xf32>
    %63 = vector.broadcast %62 : vector<2x1x8x32xf32> to vector<2x8x8x32xf32>
    %64 = arith.mulf %57, %63 : vector<2x8x8x32xf32>
    %cst_30 = arith.constant dense<0.000000e+00> : vector<2x8x32xf32>
    %65 = vector.multi_reduction <add>, %64, %cst_30 [2] : vector<2x8x8x32xf32> to vector<2x8x32xf32>
    %66 = vector.shape_cast %65 : vector<2x8x32xf32> to vector<16x32xf32>
    %cst_31 = arith.constant dense<0.000000e+00> : vector<16x32xf32>
    %67 = tpu.matmul %66, %2, %cst_31 {dimension_numbers = #tpu.dot_dimension_numbers<[1], [0], [0], [1], [0, 0, 1, 1], [], []>} : vector<16x32xf32>, vector<32x32xf32>, vector<16x32xf32> -> vector<16x32xf32>
    %68 = vector.broadcast %9 : vector<1x32xf32> to vector<16x32xf32>
    %69 = arith.addf %67, %68 : vector<16x32xf32>
    %70 = arith.addf %12, %69 : vector<16x32xf32>
    %cst_32 = arith.constant dense<0.000000e+00> : vector<16xf32>
    %71 = vector.multi_reduction <add>, %70, %cst_32 [1] : vector<16x32xf32> to vector<16xf32>
    %72 = vector.shape_cast %71 : vector<16xf32> to vector<16x1xf32>
    %cst_33 = arith.constant 3.200000e+01 : f32
    %73 = vector.broadcast %cst_33 : f32 to vector<16x1xf32>
    %74 = arith.divf %72, %73 : vector<16x1xf32>
    %75 = vector.broadcast %74 : vector<16x1xf32> to vector<16x32xf32>
    %76 = arith.subf %70, %75 : vector<16x32xf32>
    %77 = arith.mulf %76, %76 : vector<16x32xf32>
    %cst_34 = arith.constant dense<0.000000e+00> : vector<16xf32>
    %78 = vector.multi_reduction <add>, %77, %cst_34 [1] : vector<16x32xf32> to vector<16xf32>
    %79 = vector.shape_cast %78 : vector<16xf32> to vector<16x1xf32>
    %cst_35 = arith.constant 3.200000e+01 : f32
    %80 = vector.broadcast %cst_35 : f32 to vector<16x1xf32>
    %81 = arith.divf %79, %80 : vector<16x1xf32>
    %82 = vector.broadcast %74 : vector<16x1xf32> to vector<16x32xf32>
    %83 = arith.subf %70, %82 : vector<16x32xf32>
    %cst_36 = arith.constant 9.99999974E-6 : f32
    %84 = vector.broadcast %cst_36 : f32 to vector<16x1xf32>
    %85 = arith.addf %81, %84 : vector<16x1xf32>
    %86 = math.rsqrt %85 : vector<16x1xf32>
    %87 = vector.broadcast %86 : vector<16x1xf32> to vector<16x32xf32>
    %88 = arith.mulf %83, %87 : vector<16x32xf32>
    %89 = vector.broadcast %10 : vector<1x32xf32> to vector<16x32xf32>
    %90 = arith.mulf %88, %89 : vector<16x32xf32>
    %91 = vector.broadcast %11 : vector<1x32xf32> to vector<16x32xf32>
    %92 = arith.addf %90, %91 : vector<16x32xf32>
    %cst_37 = arith.constant dense<0.000000e+00> : vector<16x64xf32>
    %93 = tpu.matmul %92, %3, %cst_37 {dimension_numbers = #tpu.dot_dimension_numbers<[1], [0], [0], [1], [0, 0, 1, 1], [], []>} : vector<16x32xf32>, vector<32x64xf32>, vector<16x64xf32> -> vector<16x64xf32>
    %cst_38 = arith.constant 5.000000e-01 : f32
    %94 = vector.broadcast %cst_38 : f32 to vector<16x64xf32>
    %95 = arith.mulf %94, %93 : vector<16x64xf32>
    %cst_39 = arith.constant 0.707106769 : f32
    %96 = vector.broadcast %cst_39 : f32 to vector<16x64xf32>
    %97 = arith.mulf %93, %96 : vector<16x64xf32>
    %98 = math.erf %97 : vector<16x64xf32>
    %cst_40 = arith.constant 1.000000e+00 : f32
    %99 = vector.broadcast %cst_40 : f32 to vector<16x64xf32>
    %100 = arith.addf %99, %98 : vector<16x64xf32>
    %101 = arith.mulf %95, %100 : vector<16x64xf32>
    %cst_41 = arith.constant dense<0.000000e+00> : vector<16x32xf32>
    %102 = tpu.matmul %101, %5, %cst_41 {dimension_numbers = #tpu.dot_dimension_numbers<[1], [0], [0], [1], [0, 0, 1, 1], [], []>} : vector<16x64xf32>, vector<64x32xf32>, vector<16x32xf32> -> vector<16x32xf32>
    %103 = arith.addf %70, %102 : vector<16x32xf32>
    %c0_42 = arith.constant 0 : index
    %c0_43 = arith.constant 0 : index
    %104 = vector.load %arg7[%c0_42, %c0_43] : memref<16x32xf32, #tpu.memory_space<vmem>>, vector<16x32xf32>
    tpu.vector_store %arg7[%c0_42, %c0_43], %103 {strides = array<i32>} : memref<16x32xf32, #tpu.memory_space<vmem>>, vector<16x32xf32>,
    return
  }
}

</mosaic_0001>

<bundles_post_ra>
// kernel: tpu_custom_call.1
= control target key start
LH: loop header
LB: loop body
LE: loop exit
PB: predicated region body
PF: predicated region fallthrough
CT: control target
= control target key end

     0   :  { %12 = vsyncpa [#allocation3], 0  ;;  %s3483_s0 = inlined_call_operand.vmem [shape: f32[16,32], index: 0, kind: input, shape index: {}]   ;;  %s3484_s1 = inlined_call_operand.hbm [shape: f32[64,64], index: 1, kind: input, shape index: {}]   ;;  %s3485_s2 = inlined_call_operand.vmem [shape: f32[128,1], index: 2, kind: input, shape index: {}]   ;;  %s3486_s3 = inlined_call_operand.vmem [shape: f32[32,384], index: 3, kind: input, shape index: {}]   ;;  %s3487_s4 = inlined_call_operand.vmem [shape: f32[64,160], index: 4, kind: input, shape index: {}]   ;;  %s3488_s5 = inlined_call_operand.vmem [shape: f32[128,32], index: 5, kind: input, shape index: {}]   ;;  %s3489_s6 = inlined_call_operand.vmem [shape: f32[8,128], index: 6, kind: input, shape index: {}]   ;;  %s3490_s7 = inlined_call_operand.hbm [shape: f32[16,32], index: 7, kind: output, shape index: {}]  }
   0x1   :  { %13 = vsyncpa [#allocation4], 0  ;;  %s20_s26 = sshll.u32 %s3484_s1, 4  ;;  %s2251_s27 = smov [#allocation2]   ;;  %s21_s26 = int_to_ptr.hbm [resolvable:$true] %s20_s26 }
   0x2   :  { %s22_s28 = sshll.u32 %s2251_s27, 4  ;;  %s2252_s29 = smov 128   ;;  %s23_s28 = int_to_ptr.vmem [resolvable:$true] %s22_s28 }
   0x3   :  { %s2253_s30 = smov 8  }
   0x4   :  { %28 = dma.hbm_to_vmem [thread:$0]  %s21_s26, 1024, %s23_s28, [#allocation3], %s2252_s29, %s2252_s29, %s2253_s30  }
   0x5   :  { %2247 = dma.done.wait [#allocation3], 1024  }
   0x6   :  { %2248 = vsyncadd [#allocation3], 4294966272  ;;  %v62_v0 = vld [vmem:[%s3487_s4 + $0x70] sm:$0xff]  ;;  %v61_v1 = vld [vmem:[%s3487_s4 + $0x60] sm:$0xff]  ;;  %vm79_vm0 = vcmask 261120   ;;  %vm141_vm1 = vcmask 523264  }
   0x7   :  { %v50_v2 = vld [vmem:[%s3486_s3 + $0x50] sm:$0xff]  ;;  %174 = vmatpush.msra.mxu2 %v62_v0  ;;  %v49_v3 = vld [vmem:[%s3486_s3 + $0x48] sm:$0xff]  ;;  %v48_v4 = vld [vmem:[%s3486_s3 + $0x38] sm:$0xff]  ;;  %s2255_s8 = smov 96   ;;  %s2257_s25 = smov 64  }
   0x8   :  { %121 = vmatpush.msra.mxu1 %v50_v2  ;;  %v60_v5 = vld [vmem:[%s3487_s4 + $0x50] sm:$0xff]  ;;  %98 = vmatpush.msra.mxu0 %v49_v3  ;;  %v46_v7 = vld [vmem:[%s3486_s3 + $0x20] sm:$0xff]  ;;  %v45_v8 = vld [vmem:[%s3486_s3 + $0x18] sm:$0xff]  ;;  %s1949_s22 = sshll.u32 %s3490_s7, 4  ;;  %s1950_s22 = int_to_ptr.hbm [resolvable:$true] %s1949_s22 }
   0x9   :  { %v47_v6 = vld [vmem:[%s3486_s3 + $0x30] sm:$0xff]  ;;  %175 = vmatpush.msra.mxu2 %v61_v1  ;;  %v59_v9 = vld [vmem:[%s3487_s4 + $0x40] sm:$0xff]  ;;  %v44_v10 = vld [vmem:[%s3486_s3 + $0x8] sm:$0xff] }
   0xa   :  { %122 = vmatpush.msra.mxu1 %v48_v4  ;;  %99 = vmatpush.msra.mxu0 %v47_v6  ;;  %v77_v11 = vld [vmem:[%s3483_s0] sm:$0xff]  ;;  %v58_v13 = vld [vmem:[%s3487_s4 + $0x30] sm:$0xff]  ;;  %v78_v18 = vld [vmem:[%s3483_s0 + $0x8] sm:$0xff] }
   0xb   :  { %176 = vmatpush.msra.mxu2 %v60_v5  ;;  %v43_v12 = vld [vmem:[%s3486_s3] sm:$0xff]  ;;  %v56_v15 = vld [vmem:[%s3487_s4 + $0x10] sm:$0xff]  ;;  %v133_v19 = vld [vmem:[#allocation2 + $0x8] sm:$0xff] }
   0xc   :  { %123 = vmatpush.msra.mxu1 %v46_v7  ;;  %100 = vmatpush.msra.mxu0 %v45_v8  ;;  %v57_v14 = vld [vmem:[%s3487_s4 + $0x20] sm:$0xff]  ;;  %v134_v20 = vld [vmem:[#allocation2 + $0x10] sm:$0xff]  ;;  %v135_v21 = vld [vmem:[#allocation2 + $0x18] sm:$0xff] }
   0xd   :  { %177 = vmatpush.msra.mxu2 %v59_v9  ;;  %v55_v16 = vld [vmem:[%s3487_s4] sm:$0xff]  ;;  %v137_v23 = vld [vmem:[#allocation2 + $0x28] sm:$0xff]  ;;  %v138_v24 = vld [vmem:[#allocation2 + $0x30] sm:$0xff] }
   0xe   :  { %124 = vmatpush.msra.mxu1 %v44_v10  ;;  %101 = vmatpush.msra.mxu0 %v43_v12  ;;  %v132_v17 = vld [vmem:[#allocation2] sm:$0xff]  ;;  %v139_v25 = vld [vmem:[#allocation2 + $0x38] sm:$0xff]  ;;  %v1005_v44 = vld [vmem:[%s3488_s5 + $0x70] sm:$0xff] }
   0xf   :  { %1964 = vmatmul.msk.f32.vlgmr.msra.gmra.mxu1 %vm79_vm0, %v77_v11  ;;  %178 = vmatpush.msra.mxu2 %v58_v13  ;;  %v136_v22 = vld [vmem:[#allocation2 + $0x20] sm:$0xff]  ;;  %v1006_v40 = vld [vmem:[%s3488_s5 + $0x78] sm:$0xff]  ;;  %v1004_v47 = vld [vmem:[%s3488_s5 + $0x68] sm:$0xff] }
  0x10   :  { %1962 = vmatmul.msk.f32.vlgmr.msra.gmra.mxu0 %vm79_vm0, %v77_v11  ;;  %2002 = vmatpush.msra.mxu3 %v1006_v40  ;;  %v2406_v46 = vld [vmem:[%s3489_s6] ss:$0 sm:$0xff]  ;;  %v1002_v54 = vld [vmem:[%s3488_s5 + $0x58] sm:$0xff]  ;;  %v1001_v57 = vld [vmem:[%s3488_s5 + $0x50] sm:$0xff] }
  0x11   :  { %179 = vmatpush.msra.mxu2 %v57_v14  ;;  %1008 = vmatpush.msrb.mxu0 %v1006_v40  ;;  %v1003_v50 = vld [vmem:[%s3488_s5 + $0x60] sm:$0xff]  ;;  %v1000_v61 = vld [vmem:[%s3488_s5 + $0x48] sm:$0xff]  ;;  %v998_v8 = vld [vmem:[%s3488_s5 + $0x38] sm:$0xff] }
  0x12   :  { %2000 = vmatpush.msrb.mxu1 %v1006_v40  ;;  %2005 = vmatpush.msra.mxu3 %v1005_v44  ;;  %v999_v0 = vld [vmem:[%s3488_s5 + $0x40] sm:$0xff]  ;;  %v997_v11 = vld [vmem:[%s3488_s5 + $0x30] sm:$0xff] }
  0x13   :  { %180 = vmatpush.msra.mxu2 %v56_v15  ;;  %1009 = vmatpush.msrb.mxu0 %v1005_v44 }
  0x14   :  { %2003 = vmatpush.msrb.mxu1 %v1005_v44  ;;  %2008 = vmatpush.msra.mxu3 %v1004_v47 }
  0x15   :  { %181 = vmatpush.msra.mxu2 %v55_v16  ;;  %1010 = vmatpush.msrb.mxu0 %v1004_v47 }
  0x16   :  { %1966 = vmatmul.msk.f32.vlgmr.msra.gmra.mxu2 %vm141_vm1, %v132_v17  ;;  %2006 = vmatpush.msrb.mxu1 %v1004_v47 }
  0x17   :  { %1965 = vmatmul.msk.f32.gmra.mxu1 %vm79_vm0, %v78_v18  ;;  %2001 = vmatpush.msrb.mxu2 %v1006_v40 }
  0x18   :  { %1963 = vmatmul.msk.f32.gmra.mxu0 %vm79_vm0, %v78_v18  ;;  %2011 = vmatpush.msra.mxu3 %v1003_v50 }
  0x19   :  { %2004 = vmatpush.msrb.mxu2 %v1005_v44  ;;  %1011 = vmatpush.msrb.mxu0 %v1003_v50 }
  0x1a   :  { %2009 = vmatpush.msrb.mxu1 %v1003_v50  ;;  %2014 = vmatpush.msra.mxu3 %v1002_v54 }
  0x1b   :  { %2007 = vmatpush.msrb.mxu2 %v1004_v47  ;;  %1012 = vmatpush.msrb.mxu0 %v1002_v54 }
  0x1c   :  { %2012 = vmatpush.msrb.mxu1 %v1002_v54  ;;  %2017 = vmatpush.msra.mxu3 %v1001_v57 }
  0x1d   :  { %2010 = vmatpush.msrb.mxu2 %v1003_v50  ;;  %1013 = vmatpush.msrb.mxu0 %v1001_v57 }
  0x1e   :  { %1967 = vmatmul.msk.f32.gmra.mxu2 %vm141_vm1, %v133_v19  ;;  %2015 = vmatpush.msrb.mxu1 %v1001_v57 }
  0x1f   :  { %2013 = vmatpush.msrb.mxu2 %v1002_v54  ;;  %1014 = vmatpush.msrb.mxu0 %v1000_v61 }
  0x20   :  { %2020 = vmatpush.msra.mxu3 %v1000_v61  ;;  %2018 = vmatpush.msrb.mxu1 %v1000_v61 }
  0x21   :  { %2016 = vmatpush.msrb.mxu2 %v1001_v57  ;;  %1015 = vmatpush.msrb.mxu0 %v999_v0 }
  0x22   :  { %2023 = vmatpush.msra.mxu3 %v999_v0  ;;  %2021 = vmatpush.msrb.mxu1 %v999_v0 }
  0x23   :  { %2019 = vmatpush.msrb.mxu2 %v1000_v61  ;;  %1016 = vmatpush.msrb.mxu0 %v998_v8 }
  0x24   :  { %2026 = vmatpush.msra.mxu3 %v998_v8  ;;  %2024 = vmatpush.msrb.mxu1 %v998_v8 }
  0x25   :  { %2022 = vmatpush.msrb.mxu2 %v999_v0  ;;  %1017 = vmatpush.msrb.mxu0 %v997_v11 }
  0x26   :  { %1968 = vmatmul.msk.f32.gmra.mxu2 %vm141_vm1, %v134_v20  ;;  %2029 = vmatpush.msra.mxu3 %v997_v11  ;;  %v996_v20 = vld [vmem:[%s3488_s5 + $0x28] sm:$0xff] }
  0x27   :  { %2025 = vmatpush.msrb.mxu2 %v998_v8  ;;  %2027 = vmatpush.msrb.mxu1 %v997_v11 }
  0x28   :  { %1018 = vmatpush.msrb.mxu0 %v996_v20  ;;  %2032 = vmatpush.msra.mxu3 %v996_v20 }
  0x29   :  { %2028 = vmatpush.msrb.mxu2 %v997_v11  ;;  %2030 = vmatpush.msrb.mxu1 %v996_v20 }
  0x2b   :  { %2031 = vmatpush.msrb.mxu2 %v996_v20 }
  0x2e   :  { %1969 = vmatmul.msk.f32.gmra.mxu2 %vm141_vm1, %v135_v21 }
  0x36   :  { %1970 = vmatmul.msk.f32.gmra.mxu2 %vm141_vm1, %v136_v22 }
  0x3e   :  { %1971 = vmatmul.msk.f32.gmra.mxu2 %vm141_vm1, %v137_v23 }
  0x46   :  { %1972 = vmatmul.msk.f32.gmra.mxu2 %vm141_vm1, %v138_v24 }
  0x4e   :  { %1973 = vmatmul.msk.f32.gmra.mxu2 %vm141_vm1, %v139_v25 }
  0x8c   :  { %v2371_v26 = vpop.f32.mrf.mxu1 }
  0x8d   :  { %v2373_v27 = vpop.f32.mrf.mxu0  ;;  %v212_v28 = vrot.slane %v2371_v26, 4  ;;  %v213_v29 = vrot.slane %v2371_v26, 5  ;;  %v214_v30 = vrot.slane %v2371_v26, 6  ;;  %v215_v31 = vrot.slane %v2371_v26, 7 }
  0x8e   :  { %v223_v42 = vperm.slane %v2371_v26, 0  ;;  %v209_v53 = vrot.slane %v2371_v26, 1  ;;  %v210_v2 = vrot.slane %v2371_v26, 2  ;;  %v211_v3 = vrot.slane %v2371_v26, 3  ;;  %v995_v26 = vld [vmem:[%s3488_s5 + $0x20] sm:$0xff] }
  0x8f   :  { %v227_v32 = vperm.slane %v212_v28, 0  ;;  %v228_v33 = vperm.slane %v213_v29, 0  ;;  %v229_v34 = vperm.slane %v214_v30, 0  ;;  %v230_v35 = vperm.slane %v215_v31, 0  ;;  %1019 = vmatpush.msrb.mxu0 %v995_v26  ;;  %2035 = vmatpush.msra.mxu3 %v995_v26 }
  0x90   :  { %v255_v48 = vadd.f32 %v223_v42, %v2373_v27  ;;  %v224_v60 = vperm.slane %v209_v53, 0  ;;  %v225_v18 = vperm.slane %v210_v2, 0  ;;  %v226_v19 = vperm.slane %v211_v3, 0  ;;  %v994_v42 = vld [vmem:[%s3488_s5 + $0x18] sm:$0xff]  ;;  %2033 = vmatpush.msrb.mxu1 %v995_v26  ;;  %2034 = vmatpush.msrb.mxu2 %v995_v26  ;;  %v992_v2 = vld [vmem:[%s3488_s5 + $0x8] sm:$0xff] }
  0x91   :  { %v2380_v36 = vadd.f32 %v227_v32, %v2373_v27  ;;  %v2383_v37 = vadd.f32 %v228_v33, %v2373_v27  ;;  %v2386_v38 = vadd.f32 %v229_v34, %v2373_v27  ;;  %v2389_v39 = vadd.f32 %v230_v35, %v2373_v27  ;;  %1020 = vmatpush.msrb.mxu0 %v994_v42 }
  0x92   :  { %v256_v7 = vadd.f32 %v224_v60, %v2373_v27  ;;  %v257_v35 = vadd.f32 %v225_v18, %v2373_v27  ;;  %v258_v40 = vadd.f32 %v226_v19, %v2373_v27  ;;  %2038 = vmatpush.msra.mxu3 %v994_v42  ;;  %v993_v27 = vld [vmem:[%s3488_s5 + $0x10] sm:$0xff]  ;;  %2036 = vmatpush.msrb.mxu1 %v994_v42 }
  0x93   :  { %2037 = vmatpush.msrb.mxu2 %v994_v42  ;;  %1021 = vmatpush.msrb.mxu0 %v993_v27 }
  0x94   :  { %v2394_v41 = vpop.f32.mrf.mxu1  ;;  %2041 = vmatpush.msra.mxu3 %v993_v27  ;;  %2039 = vmatpush.msrb.mxu1 %v993_v27 }
  0x95   :  { %v231_v43 = vperm.slane %v2394_v41, 0  ;;  %v2401_v45 = vpop.f32.mrf.mxu0  ;;  %v216_v13 = vrot.slane %v2394_v41, 1  ;;  %v217_v25 = vrot.slane %v2394_v41, 2  ;;  %v222_v3 = vrot.slane %v2394_v41, 7  ;;  %2040 = vmatpush.msrb.mxu2 %v993_v27  ;;  %1022 = vmatpush.msrb.mxu0 %v992_v2 }
  0x96   :  { %2044 = vmatpush.msra.mxu3 %v992_v2  ;;  %2042 = vmatpush.msrb.mxu1 %v992_v2 }
  0x97   :  { %v263_v49 = vadd.f32 %v231_v43, %v2401_v45  ;;  %v232_v29 = vperm.slane %v216_v13, 0  ;;  %v218_v43 = vrot.slane %v2394_v41, 3  ;;  %v233_v50 = vperm.slane %v217_v25, 0  ;;  %v991_v13 = vld [vmem:[%s3488_s5] sm:$0xff]  ;;  %2043 = vmatpush.msrb.mxu2 %v992_v2 }
  0x98   :  { %1023 = vmatpush.msrb.mxu0 %v991_v13  ;;  %2047 = vmatpush.msra.mxu3 %v991_v13  ;;  %v1073_v2 = vld [vmem:[%s3485_s2] sm:$0xff] }
  0x99   :  { %v183_v51 = vpop.f32.mrf.mxu2  ;;  %v264_v53 = vadd.f32 %v232_v29, %v2401_v45  ;;  %v234_v11 = vperm.slane %v218_v43, 0  ;;  %2045 = vmatpush.msrb.mxu1 %v991_v13  ;;  %2046 = vmatpush.msrb.mxu2 %v991_v13 }
  0x9a   :  { %v184_v52 = vadd.f32 %v2406_v46, %v183_v51  ;;  %v219_v51 = vrot.slane %v2394_v41, 4 }
  0x9c   :  { %v2421_v55 = vadd.f32 %v255_v48, %v184_v52  ;;  %v2423_v56 = vadd.f32 %v263_v49, %v184_v52 }
  0x9e   :  { %v2429_v58 = vmul.f32 0.70710677, %v2421_v55  ;;  %v2432_v59 = vmul.f32 0.70710677, %v2423_v56 }
  0xa0   :  { %v319_v62 = vmul.f32 %v2429_v58, %v2429_v58  ;;  %v639_v63 = vmul.f32 %v2432_v59, %v2432_v59 }
  0xa1   :  { %v186_v1 = vpop.f32.mrf.mxu2 }
  0xa2   :  { %v2446_v4 = vmin.f32 %v319_v62, 16.0  ;;  %v2448_v5 = vmin.f32 %v639_v63, 16.0  ;;  %v2451_v6 = vadd.f32 %v2406_v46, %v186_v1  ;;  %v220_v62 = vrot.slane %v2394_v41, 5 }
  0xa3   :  { %v221_v63 = vrot.slane %v2394_v41, 6 }
  0xa4   :  { %v321_v9 = vmul.f32 2.1237322e-06, %v2446_v4  ;;  %v2459_v10 = vadd.f32 %v256_v7, %v2451_v6  ;;  %v332_v12 = vmul.f32 3.8918573e-05, %v2446_v4  ;;  %v641_v14 = vmul.f32 2.1237322e-06, %v2448_v5 }
  0xa5   :  { %v652_v15 = vmul.f32 3.8918573e-05, %v2448_v5  ;;  %v237_v29 = vperm.slane %v221_v63, 0 }
  0xa6   :  { %v322_v16 = vadd.f32 0.00028619796, %v321_v9  ;;  %v2469_v17 = vmul.f32 0.70710677, %v2459_v10  ;;  %v333_v21 = vadd.f32 0.001143296, %v332_v12  ;;  %v265_v9 = vadd.f32 %v233_v50, %v2401_v45 }
  0xa7   :  { %v642_v22 = vadd.f32 0.00028619796, %v641_v14  ;;  %v653_v28 = vadd.f32 0.001143296, %v652_v15  ;;  %v235_v12 = vperm.slane %v219_v51, 0  ;;  %v2515_v15 = vadd.f32 %v264_v53, %v2451_v6 }
  0xa8   :  { %v323_v23 = vmul.f32 %v322_v16, %v2446_v4  ;;  %v359_v24 = vmul.f32 %v2469_v17, %v2469_v17  ;;  %v334_v31 = vmul.f32 %v333_v21, %v2446_v4 }
  0xa9   :  { %v189_v30 = vpop.f32.mrf.mxu2  ;;  %v643_v32 = vmul.f32 %v642_v22, %v2448_v5  ;;  %v654_v48 = vmul.f32 %v653_v28, %v2448_v5  ;;  %v236_v22 = vperm.slane %v220_v62, 0 }
  0xaa   :  { %v324_v33 = vadd.f32 0.0036580483, %v323_v23  ;;  %v2483_v34 = vmin.f32 %v359_v24, 16.0  ;;  %v335_v44 = vadd.f32 0.014752088, %v334_v31  ;;  %v190_v61 = vadd.f32 %v2406_v46, %v189_v30 }
  0xab   :  { %v644_v47 = vadd.f32 0.0036580483, %v643_v32  ;;  %v655_v60 = vadd.f32 0.014752088, %v654_v48  ;;  %v238_v30 = vperm.slane %v222_v3, 0  ;;  %v2548_v53 = vadd.f32 %v236_v22, %v2401_v45 }
  0xac   :  { %v325_v49 = vmul.f32 %v324_v33, %v2446_v4  ;;  %v361_v52 = vmul.f32 2.1237322e-06, %v2483_v34  ;;  %v336_v54 = vmul.f32 %v335_v44, %v2446_v4  ;;  %v372_v0 = vmul.f32 3.8918573e-05, %v2483_v34 }
  0xad   :  { %v645_v57 = vmul.f32 %v644_v47, %v2448_v5  ;;  %v656_v8 = vmul.f32 %v655_v60, %v2448_v5  ;;  %v2518_v20 = vadd.f32 %v257_v35, %v190_v61  ;;  %v2522_v25 = vadd.f32 %v265_v9, %v190_v61 }
  0xae   :  { %v326_v1 = vadd.f32 0.05243302, %v325_v49  ;;  %v337_v7 = vadd.f32 0.112945676, %v336_v54  ;;  %v362_v14 = vadd.f32 0.00028619796, %v361_v52  ;;  %v266_v44 = vadd.f32 %v234_v11, %v2401_v45 }
  0xaf   :  { %v646_v18 = vadd.f32 0.05243302, %v645_v57  ;;  %v657_v19 = vadd.f32 0.112945676, %v656_v8  ;;  %v373_v23 = vadd.f32 0.001143296, %v372_v0  ;;  %v267_v52 = vadd.f32 %v235_v12, %v2401_v45 }
  0xb0   :  { %v338_v16 = vmul.f32 %v337_v7, %v2446_v4  ;;  %v327_v24 = vmul.f32 %v326_v1, %v2446_v4  ;;  %v363_v31 = vmul.f32 %v362_v14, %v2483_v34  ;;  %v2527_v32 = vmul.f32 0.70710677, %v2515_v15 }
  0xb1   :  { %v192_v41 = vpop.f32.mrf.mxu2  ;;  %v658_v26 = vmul.f32 %v657_v19, %v2448_v5  ;;  %v647_v35 = vmul.f32 %v646_v18, %v2448_v5  ;;  %v2532_v43 = vmul.f32 0.70710677, %v2518_v20  ;;  %v2539_v49 = vmul.f32 0.70710677, %v2522_v25 }
  0xb2   :  { %v193_v21 = vadd.f32 %v2406_v46, %v192_v41  ;;  %v339_v6 = vadd.f32 0.4994258, %v338_v16  ;;  %v328_v48 = vadd.f32 0.18741608, %v327_v24  ;;  %v364_v54 = vadd.f32 0.0036580483, %v363_v31 }
  0xb3   :  { %v659_v42 = vadd.f32 0.4994258, %v658_v26  ;;  %v679_v57 = vmul.f32 %v2527_v32, %v2527_v32  ;;  %v2553_v61 = vadd.f32 %v237_v29, %v2401_v45  ;;  %v648_v62 = vadd.f32 0.18741608, %v647_v35 }
  0xb4   :  { %v274_v28 = vadd.f32 %v258_v40, %v193_v21  ;;  %v340_v33 = vmul.f32 %v339_v6, %v2446_v4  ;;  %v374_v40 = vmul.f32 %v373_v23, %v2483_v34  ;;  %v399_v63 = vmul.f32 %v2532_v43, %v2532_v43 }
  0xb5   :  { %v660_v51 = vmul.f32 %v659_v42, %v2448_v5  ;;  %v329_v7 = vmul.f32 %v328_v48, %v2446_v4  ;;  %v719_v8 = vmul.f32 %v2539_v49, %v2539_v49  ;;  %v2570_v11 = vmul.f32 0.5, %v2421_v55 }
  0xb6   :  { %v2535_v47 = vmul.f32 0.70710677, %v274_v28  ;;  %v2541_v50 = vadd.f32 1.0, %v340_v33  ;;  %v375_v3 = vadd.f32 0.014752088, %v374_v40  ;;  %v2254_v14 = vmov 0  }
  0xb7   :  { %v2567_v9 = vadd.f32 1.0, %v660_v51  ;;  %2056 = vset.pattern.permute.xlu0 %v2254_v14  ;;  %v365_v41 = vmul.f32 %v364_v54, %v2483_v34  ;;  %2057 = vset.pattern.permute.xlu1 %v2254_v14  ;;  %v2577_v16 = vadd.f32 %v266_v44, %v193_v21  ;;  %v2580_v4 = vmul.f32 0.5, %v2423_v56 }
  0xb8   :  { %v439_v27 = vmul.f32 %v2535_v47, %v2535_v47  ;;  %2085 = vrcp.f32 %v2541_v50  ;;  %v649_v18 = vmul.f32 %v648_v62, %v2448_v5  ;;  %1091 = vperm.xlu0 %2056, %v1073_v2   ;;  %2058 = vset.pattern.permute.xlu2 %v2254_v14  ;;  %v2584_v55 = vmin.f32 %v679_v57, 16.0 }
  0xb9   :  { %v195_v60 = vpop.f32.mrf.mxu2  ;;  %2087 = vrcp.f32 %v2567_v9  ;;  %v376_v19 = vmul.f32 %v375_v3, %v2483_v34  ;;  %v2591_v22 = vmul.f32 0.5, %v2515_v15  ;;  %v330_v23 = vadd.f32 1.1283791, %v329_v7 }
  0xba   :  { %v2558_v0 = vmin.f32 %v439_v27, 16.0  ;;  %v196_v1 = vadd.f32 %v2406_v46, %v195_v60  ;;  %v2593_v56 = vmin.f32 %v399_v63, 16.0  ;;  %v2595_v24 = vmin.f32 %v719_v8, 16.0 }
  0xbb   :  { %v2597_v6 = vmul.f32 0.5, %v274_v28  ;;  %v366_v29 = vadd.f32 0.05243302, %v365_v41  ;;  %v2604_v31 = vmul.f32 0.70710677, %v2577_v16  ;;  %v2607_v33 = vadd.f32 %v238_v30, %v2401_v45 }
  0xbc   :  { %v441_v12 = vmul.f32 2.1237322e-06, %v2558_v0  ;;  %v2574_v13 = vadd.f32 %v2380_v36, %v196_v1  ;;  %v2587_v36 = vmul.f32 0.5, %v2459_v10  ;;  %v2601_v10 = vmul.f32 0.5, %v2518_v20 }
  0xbd   :  { %v650_v35 = vadd.f32 1.1283791, %v649_v18  ;;  %v377_v42 = vadd.f32 0.112945676, %v376_v19  ;;  %v351_v28 = vand.u32 2147483647, %v2541_v50  ;;  %v331_v20 = vmul.f32 %v330_v23, %v2429_v58 }
  0xbe   :  { %v2086_v21 = vpop.eup %2085  ;;  %v442_v5 = vadd.f32 0.00028619796, %v441_v12  ;;  %v353_v40 = vand.u32 2147483648, %v2541_v50  ;;  %v681_v48 = vmul.f32 2.1237322e-06, %v2584_v55  ;;  %v2616_v45 = vadd.f32 %v267_v52, %v196_v1 }
  0xbf   :  { %v343_v26 = vmul.f32 %v2086_v21, %v2541_v50  ;;  %v2088_v51 = vpop.eup %2087  ;;  %v378_v57 = vmul.f32 %v377_v42, %v2483_v34  ;;  %v367_v62 = vmul.f32 %v366_v29, %v2483_v34  ;;  %vm347_vm2 = vweird.f32 %v2541_v50 }
  0xc0   :  { %v443_v27 = vmul.f32 %v442_v5, %v2558_v0  ;;  %v663_v60 = vmul.f32 %v2088_v51, %v2567_v9  ;;  %vm348_vm3 = vweird.f32 %v2086_v21  ;;  %vm2624_vm4 = vcmp.eq.f32.partialorder %v351_v28, 8.507059e+37 }
  0xc1   :  { %v198_v15 = vpop.f32.mrf.mxu2  ;;  %v344_v54 = vsub.f32 1.0, %v343_v26  ;;  %v379_v2 = vadd.f32 0.4994258, %v378_v57  ;;  %v354_v3 = vor.u32 1.1754944e-38, %v353_v40  ;;  %v673_v52 = vand.u32 2147483648, %v2567_v9  ;;  %vm349_vm5 = vmor %vm347_vm2, %vm348_vm3 }
  0xc2   :  { %v199_v44 = vadd.f32 %v2406_v46, %v198_v15  ;;  %v682_v1 = vadd.f32 0.00028619796, %v681_v48  ;;  %v444_v7 = vadd.f32 0.0036580483, %v443_v27  ;;  %v664_v8 = vsub.f32 1.0, %v663_v60 }
  0xc3   :  { %v345_v63 = vmul.f32 %v2086_v21, %v344_v54  ;;  %v380_v12 = vmul.f32 %v379_v2, %v2483_v34  ;;  %v759_v14 = vmul.f32 %v2604_v31, %v2604_v31  ;;  %v2633_v50 = vmul.f32 0.70710677, %v2574_v13 }
  0xc4   :  { %v2619_v30 = vadd.f32 %v2383_v37, %v199_v44  ;;  %v2636_v41 = vmul.f32 0.70710677, %v2616_v45  ;;  %v368_v18 = vadd.f32 0.18741608, %v367_v62  ;;  %v665_v5 = vmul.f32 %v2088_v51, %v664_v8 }
  0xc5   :  { %v346_v37 = vadd.f32 %v2086_v21, %v345_v63  ;;  %vm668_vm6 = vweird.f32 %v2088_v51  ;;  %v2638_v26 = vadd.f32 1.0, %v380_v12  ;;  %vm667_vm7 = vweird.f32 %v2567_v9 }
  0xc6   :  { %v671_v15 = vand.u32 2147483647, %v2567_v9  ;;  %v683_v42 = vmul.f32 %v682_v1, %v2584_v55  ;;  %v445_v28 = vmul.f32 %v444_v7, %v2558_v0  ;;  %v666_v48 = vadd.f32 %v2088_v51, %v665_v5  ;;  %vm669_vm8 = vmor %vm667_vm7, %vm668_vm6 }
  0xc7   :  { %v350_v23 = vsel %vm349_vm5, %v2086_v21, %v346_v37  ;;  %2089 = vrcp.f32 %v2638_v26  ;;  %v2649_v21 = vadd.f32 %v2548_v53, %v199_v44  ;;  %v674_v57 = vor.u32 1.1754944e-38, %v673_v52 }
  0xc8   :  { %v355_v40 = vsel %vm2624_vm4, %v354_v3, %v350_v23  ;;  %v479_v9 = vmul.f32 %v2633_v50, %v2633_v50  ;;  %v799_v60 = vmul.f32 %v2636_v41, %v2636_v41  ;;  %v670_v62 = vsel %vm669_vm8, %v2088_v51, %v666_v48 }
  0xc9   :  { %v201_v19 = vpop.f32.mrf.mxu2  ;;  %v356_v54 = vmul.f32 %v355_v40, %v331_v20  ;;  %v369_v63 = vmul.f32 %v368_v18, %v2483_v34  ;;  %v651_v58 = vmul.f32 %v650_v35, %v2432_v59  ;;  %vm672_vm9 = vcmp.eq.f32.partialorder %v671_v15, 8.507059e+37 }
  0xca   :  { %v202_v29 = vadd.f32 %v2406_v46, %v201_v19  ;;  %v684_v53 = vadd.f32 0.0036580483, %v683_v42  ;;  %v446_v44 = vadd.f32 0.05243302, %v445_v28  ;;  %v2663_v20 = vmul.f32 0.70710677, %v2619_v30 }
  0xcb   :  { %v1974_v2 = vclamps-f32 %v356_v54, 1.0  ;;  %v675_v3 = vsel %vm672_vm9, %v674_v57, %v670_v62  ;;  %v2666_v52 = vmul.f32 0.70710677, %v2649_v21  ;;  %v2671_v37 = vmin.f32 %v479_v9, 16.0 }
  0xcc   :  { %v2652_v27 = vadd.f32 %v2386_v38, %v202_v29  ;;  %v2660_v38 = vmin.f32 %v759_v14, 16.0  ;;  %v676_v34 = vmul.f32 %v675_v3, %v651_v58  ;;  %v2673_v59 = vmin.f32 %v799_v60, 16.0 }
  0xcd   :  { %v959_v51 = vadd.f32 1.0, %v1974_v2  ;;  %v2090_v7 = vpop.eup %2089  ;;  %v370_v8 = vadd.f32 1.1283791, %v369_v63  ;;  %v692_v12 = vmul.f32 3.8918573e-05, %v2584_v55  ;;  %v685_v23 = vmul.f32 %v684_v53, %v2584_v55 }
  0xce   :  { %v2669_v1 = vmul.f32 0.70710677, %v2652_v27  ;;  %v1982_v19 = vclamps-f32 %v676_v34, 1.0  ;;  %v447_v5 = vmul.f32 %v446_v44, %v2558_v0  ;;  %v519_v15 = vmul.f32 %v2663_v20, %v2663_v20 }
  0xcf   :  { %v975_v18 = vmul.f32 %v959_v51, %v2570_v11  ;;  %v383_v42 = vmul.f32 %v2090_v7, %v2638_v26  ;;  %v401_v28 = vmul.f32 2.1237322e-06, %v2593_v56  ;;  %v2688_v40 = vmul.f32 %v2666_v52, %v2666_v52 }
  0xd0   :  { %v967_v48 = vadd.f32 1.0, %v1982_v19  ;;  %v2697_v54 = vadd.f32 %v2553_v61, %v202_v29  ;;  %v371_v57 = vmul.f32 %v370_v8, %v2469_v17  ;;  %v693_v60 = vadd.f32 0.001143296, %v692_v12 }
  0xd1   :  { %v204_v35 = vpop.f32.mrf.mxu2  ;;  %1024 = vmatmul.f32.vlgmr.msrb.gmra.mxu0 %v975_v18  ;;  %v384_v9 = vsub.f32 1.0, %v383_v42  ;;  %v391_v63 = vand.u32 2147483647, %v2638_v26  ;;  %v393_v2 = vand.u32 2147483648, %v2638_v26  ;;  %v686_v58 = vadd.f32 0.05243302, %v685_v23 }
  0xd2   :  { %v2677_v14 = vadd.f32 %v2406_v46, %v204_v35  ;;  %v559_v46 = vmul.f32 %v2669_v1, %v2669_v1  ;;  %v983_v62 = vmul.f32 %v967_v48, %v2580_v4  ;;  %vm388_vm10 = vweird.f32 %v2090_v7 }
  0xd3   :  { %v385_v53 = vmul.f32 %v2090_v7, %v384_v9  ;;  %v402_v44 = vadd.f32 0.00028619796, %v401_v28  ;;  %v448_v3 = vadd.f32 0.18741608, %v447_v5  ;;  %v2704_v51 = vmin.f32 %v519_v15, 16.0 }
  0xd4   :  { %v2694_v11 = vadd.f32 %v2389_v39, %v2677_v14  ;;  %v694_v39 = vmul.f32 %v693_v60, %v2584_v55  ;;  %v2706_v61 = vmin.f32 %v559_v46, 16.0  ;;  %1048 = vmatmul.f32.vlgmr.msra.gmra.mxu3 %v983_v62  ;;  %v412_v17 = vmul.f32 3.8918573e-05, %v2593_v56 }
  0xd5   :  { %v386_v29 = vadd.f32 %v2090_v7, %v385_v53  ;;  %vm387_vm11 = vweird.f32 %v2638_v26  ;;  %v403_v34 = vmul.f32 %v402_v44, %v2593_v56  ;;  %v2712_v35 = vmul.f32 0.70710677, %v2697_v54 }
  0xd6   :  { %v695_v4 = vadd.f32 0.014752088, %v694_v39  ;;  %vm389_vm12 = vmor %vm387_vm11, %vm388_vm10  ;;  %v394_v8 = vor.u32 1.1754944e-38, %v393_v2  ;;  %v687_v12 = vmul.f32 %v686_v58, %v2584_v55  ;;  %v413_v18 = vadd.f32 0.001143296, %v412_v17 }
  0xd7   :  { %v390_v19 = vsel %vm389_vm12, %v2090_v7, %v386_v29  ;;  %vm392_vm13 = vcmp.eq.f32.partialorder %v391_v63, 8.507059e+37  ;;  %v404_v5 = vadd.f32 0.0036580483, %v403_v34  ;;  %v561_v15 = vmul.f32 2.1237322e-06, %v2706_v61  ;;  %v1074_v29 = vld [vmem:[%s3485_s2 + $0x8] sm:$0xff] }
  0xd8   :  { %v696_v23 = vmul.f32 %v695_v4, %v2584_v55  ;;  %v395_v42 = vsel %vm392_vm13, %v394_v8, %v390_v19  ;;  %v414_v26 = vmul.f32 %v413_v18, %v2593_v56  ;;  %v721_v28 = vmul.f32 2.1237322e-06, %v2595_v24  ;;  %1096 = vperm.xlu0 %2056, %v1074_v29  }
  0xd9   :  { %v396_v46 = vmul.f32 %v395_v42, %v371_v57  ;;  %v405_v9 = vmul.f32 %v404_v5, %v2593_v56  ;;  %v732_v60 = vmul.f32 3.8918573e-05, %v2595_v24  ;;  %v449_v62 = vmul.f32 %v448_v3, %v2558_v0  ;;  %v1075_v57 = vld [vmem:[%s3485_s2 + $0x10] sm:$0xff] }
  0xda   :  { %v697_v48 = vadd.f32 0.112945676, %v696_v23  ;;  %v688_v7 = vadd.f32 0.18741608, %v687_v12  ;;  %v415_v63 = vadd.f32 0.014752088, %v414_v26  ;;  %1101 = vperm.xlu1 %2057, %v1075_v57   ;;  %v879_v5 = vmul.f32 %v2712_v35, %v2712_v35 }
  0xdb   :  { %v722_v2 = vadd.f32 0.00028619796, %v721_v28  ;;  %v1975_v58 = vclamps-f32 %v396_v46, 1.0  ;;  %v406_v39 = vadd.f32 0.05243302, %v405_v9  ;;  %v2756_v57 = vadd.f32 %v2607_v33, %v2677_v14 }
  0xdc   :  { %v698_v53 = vmul.f32 %v697_v48, %v2584_v55  ;;  %v733_v44 = vadd.f32 0.001143296, %v732_v60  ;;  %v562_v17 = vadd.f32 0.00028619796, %v561_v15  ;;  %v416_v4 = vmul.f32 %v415_v63, %v2593_v56 }
  0xdd   :  { %v723_v3 = vmul.f32 %v722_v2, %v2595_v24  ;;  %v452_v34 = vmul.f32 3.8918573e-05, %v2558_v0  ;;  %v960_v8 = vadd.f32 1.0, %v1975_v58  ;;  %v407_v18 = vmul.f32 %v406_v39, %v2593_v56 }
  0xde   :  { %v699_v12 = vadd.f32 0.4994258, %v698_v53  ;;  %v734_v19 = vmul.f32 %v733_v44, %v2595_v24  ;;  %v450_v23 = vadd.f32 1.1283791, %v449_v62  ;;  %v417_v15 = vadd.f32 0.112945676, %v416_v4 }
  0xdf   :  { %v724_v42 = vadd.f32 0.0036580483, %v723_v3  ;;  %v976_v26 = vmul.f32 %v960_v8, %v2587_v36  ;;  %v689_v28 = vmul.f32 %v688_v7, %v2584_v55  ;;  %v563_v9 = vmul.f32 %v562_v17, %v2706_v61 }
  0xe0   :  { %v700_v46 = vmul.f32 %v699_v12, %v2584_v55  ;;  %v735_v48 = vadd.f32 0.014752088, %v734_v19  ;;  %v418_v60 = vmul.f32 %v417_v15, %v2593_v56  ;;  %v453_v2 = vadd.f32 0.001143296, %v452_v34 }
  0xe1   :  { %v725_v63 = vmul.f32 %v724_v42, %v2595_v24  ;;  %v2743_v62 = vmin.f32 %v2688_v40, 16.0  ;;  %1027 = vmatmul.f32.gmra.mxu0 %v976_v26  ;;  %v408_v53 = vadd.f32 0.18741608, %v407_v18  ;;  %v2749_v7 = vmul.f32 %v450_v23, %v2535_v47 }
  0xe2   :  { %v2745_v58 = vadd.f32 1.0, %v700_v46  ;;  %v736_v36 = vmul.f32 %v735_v48, %v2595_v24  ;;  %v419_v55 = vadd.f32 0.4994258, %v418_v60  ;;  %v454_v44 = vmul.f32 %v453_v2, %v2558_v0  ;;  %v1079_v46 = vld [vmem:[%s3485_s2 + $0x30] sm:$0xff] }
  0xe3   :  { %v726_v39 = vadd.f32 0.05243302, %v725_v63  ;;  %v2752_v17 = vmin.f32 %v879_v5, 16.0  ;;  %v690_v40 = vadd.f32 1.1283791, %v689_v28  ;;  %v2761_v3 = vmul.f32 0.5, %v2522_v25  ;;  %1121 = vperm.xlu0 %2056, %v1079_v46  }
  0xe4   :  { %2091 = vrcp.f32 %v2745_v58  ;;  %v564_v29 = vadd.f32 0.0036580483, %v563_v9  ;;  %v420_v4 = vmul.f32 %v419_v55, %v2593_v56  ;;  %v2765_v34 = vmul.f32 0.70710677, %v2694_v11  ;;  %v1076_v28 = vld [vmem:[%s3485_s2 + $0x18] sm:$0xff] }
  0xe5   :  { %v727_v47 = vmul.f32 %v726_v39, %v2595_v24  ;;  %v409_v8 = vmul.f32 %v408_v53, %v2593_v56  ;;  %v737_v12 = vadd.f32 0.112945676, %v736_v36  ;;  %v455_v18 = vadd.f32 0.014752088, %v454_v44  ;;  %1106 = vperm.xlu1 %2057, %v1076_v28  }
  0xe6   :  { %v711_v33 = vand.u32 2147483647, %v2745_v58  ;;  %v713_v14 = vand.u32 2147483648, %v2745_v58  ;;  %v2770_v19 = vadd.f32 1.0, %v420_v4  ;;  %v761_v23 = vmul.f32 2.1237322e-06, %v2660_v38 }
  0xe7   :  { %v2774_v25 = vmul.f32 0.70710677, %v2756_v57  ;;  %v691_v5 = vmul.f32 %v690_v40, %v2527_v32  ;;  %v738_v15 = vmul.f32 %v737_v12, %v2595_v24  ;;  %v456_v42 = vmul.f32 %v455_v18, %v2558_v0 }
  0xe8   :  { %v2780_v56 = vmul.f32 %v564_v29, %v2706_v61  ;;  %2093 = vrcp.f32 %v2770_v19  ;;  %v728_v26 = vadd.f32 0.18741608, %v727_v47  ;;  %v772_v32 = vmul.f32 3.8918573e-05, %v2660_v38 }
  0xe9   :  { %vm707_vm14 = vweird.f32 %v2745_v58  ;;  %v739_v9 = vadd.f32 0.4994258, %v738_v15  ;;  %v457_v60 = vadd.f32 0.112945676, %v456_v42  ;;  %v762_v63 = vadd.f32 0.00028619796, %v761_v23 }
  0xea   :  { %v2092_v48 = vpop.eup %2091  ;;  %vm2792_vm15 = vcmp.eq.f32.partialorder %v711_v33, 8.507059e+37  ;;  %v714_v36 = vor.u32 1.1754944e-38, %v713_v14  ;;  %v410_v55 = vadd.f32 1.1283791, %v409_v8  ;;  %v431_v39 = vand.u32 2147483647, %v2770_v19 }
  0xeb   :  { %v703_v2 = vmul.f32 %v2092_v48, %v2745_v58  ;;  %v740_v44 = vmul.f32 %v739_v9, %v2595_v24  ;;  %v458_v40 = vmul.f32 %v457_v60, %v2558_v0  ;;  %v763_v29 = vmul.f32 %v762_v63, %v2660_v38 }
  0xec   :  { %v729_v47 = vmul.f32 %v728_v26, %v2595_v24  ;;  %v773_v12 = vadd.f32 0.001143296, %v772_v32  ;;  %v481_v18 = vmul.f32 2.1237322e-06, %v2671_v37  ;;  %v433_v33 = vand.u32 2147483648, %v2770_v19 }
  0xed   :  { %v704_v4 = vsub.f32 1.0, %v703_v2  ;;  %v2803_v23 = vadd.f32 1.0, %v740_v44  ;;  %v459_v14 = vadd.f32 0.4994258, %v458_v40  ;;  %v764_v8 = vadd.f32 0.0036580483, %v763_v29 }
  0xee   :  { %v2094_v15 = vpop.eup %2093  ;;  %vm708_vm2 = vweird.f32 %v2092_v48  ;;  %v411_v28 = vmul.f32 %v410_v55, %v2532_v43  ;;  %v774_v46 = vmul.f32 %v773_v12, %v2660_v38  ;;  %vm427_vm3 = vweird.f32 %v2770_v19 }
  0xef   :  { %v705_v42 = vmul.f32 %v2092_v48, %v704_v4  ;;  %v423_v9 = vmul.f32 %v2094_v15, %v2770_v19  ;;  %vm2809_vm4 = vcmp.eq.f32.partialorder %v431_v39, 8.507059e+37  ;;  %2095 = vrcp.f32 %v2803_v23  ;;  %vm709_vm5 = vmor %vm707_vm14, %vm708_vm2 }
  0xf0   :  { %v730_v32 = vadd.f32 1.1283791, %v729_v47  ;;  %v460_v60 = vmul.f32 %v459_v14, %v2558_v0  ;;  %v482_v63 = vadd.f32 0.00028619796, %v481_v18  ;;  %v434_v2 = vor.u32 1.1754944e-38, %v433_v33 }
  0xf1   :  { %v706_v26 = vadd.f32 %v2092_v48, %v705_v42  ;;  %v424_v43 = vsub.f32 1.0, %v423_v9  ;;  %v765_v55 = vmul.f32 %v764_v8, %v2660_v38  ;;  %v775_v44 = vadd.f32 0.014752088, %v774_v46 }
  0xf2   :  { %vm428_vm6 = vweird.f32 %v2094_v15  ;;  %v751_v39 = vand.u32 2147483647, %v2803_v23  ;;  %v2819_v29 = vadd.f32 1.0, %v460_v60  ;;  %v731_v18 = vmul.f32 %v730_v32, %v2539_v49 }
  0xf3   :  { %v710_v40 = vsel %vm709_vm5, %v2092_v48, %v706_v26  ;;  %v425_v47 = vmul.f32 %v2094_v15, %v424_v43  ;;  %v766_v0 = vadd.f32 0.05243302, %v765_v55  ;;  %v776_v12 = vmul.f32 %v775_v44, %v2660_v38  ;;  %vm429_vm7 = vmor %vm427_vm3, %vm428_vm6 }
  0xf4   :  { %v715_v4 = vsel %vm2792_vm15, %v714_v36, %v710_v40  ;;  %2097 = vrcp.f32 %v2819_v29  ;;  %v483_v33 = vmul.f32 %v482_v63, %v2671_v37  ;;  %v753_v8 = vand.u32 2147483648, %v2803_v23 }
  0xf5   :  { %v716_v58 = vmul.f32 %v715_v4, %v691_v5  ;;  %v2096_v48 = vpop.eup %2095  ;;  %v426_v14 = vadd.f32 %v2094_v15, %v425_v47  ;;  %v767_v42 = vmul.f32 %v766_v0, %v2660_v38  ;;  %v777_v46 = vadd.f32 0.112945676, %v776_v12  ;;  %v1082_v4 = vld [vmem:[%s3485_s2 + $0x48] sm:$0xff] }
  0xf6   :  { %v743_v5 = vmul.f32 %v2096_v48, %v2803_v23  ;;  %vm747_vm8 = vweird.f32 %v2803_v23  ;;  %v492_v49 = vmul.f32 3.8918573e-05, %v2671_v37  ;;  %vm2835_vm9 = vcmp.eq.f32.partialorder %v751_v39, 8.507059e+37  ;;  %v1080_v39 = vld [vmem:[%s3485_s2 + $0x38] sm:$0xff]  ;;  %1136 = vperm.xlu0 %2056, %v1082_v4  }
  0xf7   :  { %v1983_v53 = vclamps-f32 %v716_v58, 1.0  ;;  %v430_v36 = vsel %vm429_vm7, %v2094_v15, %v426_v14  ;;  %v768_v26 = vadd.f32 0.18741608, %v767_v42  ;;  %v778_v32 = vmul.f32 %v777_v46, %v2660_v38  ;;  %v1077_v15 = vld [vmem:[%s3485_s2 + $0x20] sm:$0xff]  ;;  %1126 = vperm.xlu1 %2057, %v1080_v39  }
  0xf8   :  { %v435_v63 = vsel %vm2809_vm4, %v434_v2, %v430_v36  ;;  %v744_v19 = vsub.f32 1.0, %v743_v5  ;;  %v484_v43 = vadd.f32 0.0036580483, %v483_v33  ;;  %vm748_vm10 = vweird.f32 %v2096_v48  ;;  %1111 = vperm.xlu2 %2058, %v1077_v15  }
  0xf9   :  { %v968_v60 = vadd.f32 1.0, %v1983_v53  ;;  %v436_v55 = vmul.f32 %v435_v63, %v411_v28  ;;  %v754_v44 = vor.u32 1.1754944e-38, %v753_v8  ;;  %v779_v40 = vadd.f32 0.4994258, %v778_v32  ;;  %vm749_vm11 = vmor %vm747_vm8, %vm748_vm10 }
  0xfa   :  { %v2098_v24 = vpop.eup %2097  ;;  %v745_v47 = vmul.f32 %v2096_v48, %v744_v19  ;;  %v485_v28 = vmul.f32 %v484_v43, %v2671_v37  ;;  %v493_v0 = vadd.f32 0.001143296, %v492_v49  ;;  %v471_v33 = vand.u32 2147483647, %v2819_v29 }
  0xfb   :  { %v984_v2 = vmul.f32 %v968_v60, %v2591_v22  ;;  %v1976_v12 = vclamps-f32 %v436_v55, 1.0  ;;  %v463_v58 = vmul.f32 %v2098_v24, %v2819_v29  ;;  %v473_v14 = vand.u32 2147483648, %v2819_v29 }
  0xfc   :  { %v746_v8 = vadd.f32 %v2096_v48, %v745_v47  ;;  %v769_v42 = vmul.f32 %v768_v26, %v2660_v38  ;;  %v780_v22 = vmul.f32 %v779_v40, %v2660_v38  ;;  %v494_v46 = vmul.f32 %v493_v0, %v2671_v37 }
  0xfd   :  { %1051 = vmatmul.f32.gmra.mxu3 %v984_v2  ;;  %v961_v53 = vadd.f32 1.0, %v1976_v12  ;;  %v464_v5 = vsub.f32 1.0, %v463_v58  ;;  %vm468_vm12 = vweird.f32 %v2098_v24  ;;  %v801_v49 = vmul.f32 2.1237322e-06, %v2673_v59 }
  0xfe   :  { %v750_v36 = vsel %vm749_vm11, %v2096_v48, %v746_v8  ;;  %v2863_v32 = vadd.f32 1.0, %v780_v22  ;;  %v486_v60 = vadd.f32 0.05243302, %v485_v28  ;;  %v495_v63 = vadd.f32 0.014752088, %v494_v46 }
  0xff   :  { %v977_v26 = vmul.f32 %v961_v53, %v2601_v10  ;;  %v755_v38 = vsel %vm2835_vm9, %v754_v44, %v750_v36  ;;  %v465_v19 = vmul.f32 %v2098_v24, %v464_v5  ;;  %v802_v43 = vadd.f32 0.00028619796, %v801_v49 }
 0x100   :  { %v566_v55 = vadd.f32 0.05243302, %v2780_v56  ;;  %v2871_v23 = vmul.f32 %v2765_v34, %v2765_v34  ;;  %v756_v40 = vmul.f32 %v755_v38, %v731_v18  ;;  %2099 = vrcp.f32 %v2863_v32 }
 0x101   :  { %1030 = vmatmul.f32.gmra.mxu0 %v977_v26  ;;  %v466_v48 = vadd.f32 %v2098_v24, %v465_v19  ;;  %vm467_vm13 = vweird.f32 %v2819_v29  ;;  %vm472_vm14 = vcmp.eq.f32.partialorder %v471_v33, 8.507059e+37  ;;  %v496_v10 = vmul.f32 %v495_v63, %v2671_v37 }
 0x102   :  { %v1984_v9 = vclamps-f32 %v756_v40, 1.0  ;;  %vm469_vm15 = vmor %vm467_vm13, %vm468_vm12  ;;  %v474_v44 = vor.u32 1.1754944e-38, %v473_v14  ;;  %v803_v56 = vmul.f32 %v802_v43, %v2673_v59  ;;  %v812_v15 = vmul.f32 3.8918573e-05, %v2673_v59 }
 0x103   :  { %v470_v39 = vsel %vm469_vm15, %v2098_v24, %v466_v48  ;;  %v770_v4 = vadd.f32 1.1283791, %v769_v42  ;;  %v487_v18 = vmul.f32 %v486_v60, %v2671_v37  ;;  %v497_v2 = vadd.f32 0.112945676, %v496_v10 }
 0x104   :  { %v969_v47 = vadd.f32 1.0, %v1984_v9  ;;  %v475_v28 = vsel %vm472_vm14, %v474_v44, %v470_v39  ;;  %v804_v0 = vadd.f32 0.0036580483, %v803_v56  ;;  %v813_v29 = vadd.f32 0.001143296, %v812_v15 }
 0x105   :  { %v476_v12 = vmul.f32 %v475_v28, %v2749_v7  ;;  %v791_v58 = vand.u32 2147483647, %v2863_v32  ;;  %v498_v33 = vmul.f32 %v497_v2, %v2671_v37  ;;  %v521_v14 = vmul.f32 2.1237322e-06, %v2704_v51 }
 0x106   :  { %v2100_v8 = vpop.eup %2099  ;;  %v985_v22 = vmul.f32 %v969_v47, %v2761_v3  ;;  %v805_v24 = vmul.f32 %v804_v0, %v2673_v59  ;;  %v814_v42 = vmul.f32 %v813_v29, %v2673_v59  ;;  %v532_v46 = vmul.f32 3.8918573e-05, %v2704_v51 }
 0x107   :  { %v1977_v53 = vclamps-f32 %v476_v12, 1.0  ;;  %v783_v5 = vmul.f32 %v2100_v8, %v2863_v32  ;;  %v793_v7 = vand.u32 2147483648, %v2863_v32  ;;  %v488_v49 = vadd.f32 0.18741608, %v487_v18 }
 0x108   :  { %v567_v36 = vmul.f32 %v566_v55, %v2706_v61  ;;  %1054 = vmatmul.f32.gmra.mxu3 %v985_v22  ;;  %v499_v60 = vadd.f32 0.4994258, %v498_v33  ;;  %v806_v63 = vadd.f32 0.05243302, %v805_v24  ;;  %v815_v26 = vadd.f32 0.014752088, %v814_v42 }
 0x109   :  { %v962_v38 = vadd.f32 1.0, %v1977_v53  ;;  %v784_v3 = vsub.f32 1.0, %v783_v5  ;;  %v522_v19 = vadd.f32 0.00028619796, %v521_v14  ;;  %v533_v43 = vadd.f32 0.001143296, %v532_v46 }
 0x10a   :  { %vm788_vm2 = vweird.f32 %v2100_v8  ;;  %v500_v40 = vmul.f32 %v499_v60, %v2671_v37  ;;  %v807_v48 = vmul.f32 %v806_v63, %v2673_v59  ;;  %v816_v10 = vmul.f32 %v815_v26, %v2673_v59  ;;  %v1083_v22 = vld [vmem:[%s3485_s2 + $0x50] sm:$0xff]  ;;  %v2926_v5 = vld [vmem:[%s3486_s3 + $0x58] sm:$0xff] }
 0x10b   :  { %v978_v9 = vmul.f32 %v962_v38, %v2597_v6  ;;  %v785_v44 = vmul.f32 %v2100_v8, %v784_v3  ;;  %v523_v55 = vmul.f32 %v522_v19, %v2704_v51  ;;  %v534_v56 = vmul.f32 %v533_v43, %v2704_v51  ;;  %1141 = vperm.xlu1 %2057, %v1083_v22  }
 0x10c   :  { %v771_v15 = vmul.f32 %v770_v4, %v2604_v31  ;;  %vm787_vm3 = vweird.f32 %v2863_v32  ;;  %v2899_v39 = vadd.f32 1.0, %v500_v40  ;;  %v817_v18 = vadd.f32 0.112945676, %v816_v10  ;;  %1502 = vmatpush.msra.mxu0 %v2926_v5 }
 0x10d   :  { %1033 = vmatmul.f32.vlgmr.msrb.gmra.mxu1 %v978_v9  ;;  %v786_v2 = vadd.f32 %v2100_v8, %v785_v44  ;;  %v489_v47 = vmul.f32 %v488_v49, %v2671_v37  ;;  %v524_v28 = vadd.f32 0.0036580483, %v523_v55  ;;  %v535_v0 = vadd.f32 0.014752088, %v534_v56  ;;  %vm789_vm4 = vmor %vm787_vm3, %vm788_vm2 }
 0x10e   :  { %vm792_vm5 = vcmp.eq.f32.partialorder %v791_v58, 8.507059e+37  ;;  %v794_v6 = vor.u32 1.1754944e-38, %v793_v7  ;;  %2101 = vrcp.f32 %v2899_v39  ;;  %v841_v29 = vmul.f32 2.1237322e-06, %v2743_v62  ;;  %v1078_v58 = vld [vmem:[%s3485_s2 + $0x28] sm:$0xff] }
 0x10f   :  { %v790_v31 = vsel %vm789_vm4, %v2100_v8, %v786_v2  ;;  %v808_v4 = vadd.f32 0.18741608, %v807_v48  ;;  %v818_v32 = vmul.f32 %v817_v18, %v2673_v59  ;;  %v525_v12 = vmul.f32 %v524_v28, %v2704_v51  ;;  %v1085_v8 = vld [vmem:[%s3485_s2 + $0x60] sm:$0xff]  ;;  %1116 = vperm.xlu2 %2058, %v1078_v58  }
 0x110   :  { %v2907_v33 = vadd.f32 0.18741608, %v567_v36  ;;  %v2910_v37 = vmin.f32 %v2871_v23, 16.0  ;;  %v795_v14 = vsel %vm792_vm5, %v794_v6, %v790_v31  ;;  %v536_v24 = vmul.f32 %v535_v0, %v2704_v51  ;;  %1151 = vperm.xlu0 %2056, %v1085_v8  }
 0x111   :  { %v298_v42 = vmul.f32 0.5, %v2577_v16  ;;  %v796_v46 = vmul.f32 %v795_v14, %v771_v15  ;;  %v490_v23 = vadd.f32 1.1283791, %v489_v47  ;;  %v819_v53 = vadd.f32 0.4994258, %v818_v32 }
 0x112   :  { %v2930_v7 = vmul.f32 %v2774_v25, %v2774_v25  ;;  %v526_v49 = vadd.f32 0.05243302, %v525_v12  ;;  %v537_v36 = vadd.f32 0.112945676, %v536_v24  ;;  %v842_v16 = vadd.f32 0.00028619796, %v841_v29 }
 0x113   :  { %v1985_v60 = vclamps-f32 %v796_v46, 1.0  ;;  %v2934_v63 = vmul.f32 0.5, %v2574_v13  ;;  %v809_v26 = vmul.f32 %v808_v4, %v2673_v59  ;;  %v820_v38 = vmul.f32 %v819_v53, %v2673_v59 }
 0x114   :  { %v2102_v3 = vpop.eup %2101  ;;  %v527_v19 = vmul.f32 %v526_v49, %v2704_v51  ;;  %v538_v43 = vmul.f32 %v537_v36, %v2704_v51  ;;  %v843_v40 = vmul.f32 %v842_v16, %v2743_v62  ;;  %v852_v48 = vmul.f32 3.8918573e-05, %v2743_v62 }
 0x115   :  { %v970_v10 = vadd.f32 1.0, %v1985_v60  ;;  %v503_v9 = vmul.f32 %v2102_v3, %v2899_v39  ;;  %v2943_v44 = vadd.f32 1.0, %v820_v38  ;;  %v572_v13 = vmul.f32 3.8918573e-05, %v2706_v61 }
 0x116   :  { %v491_v55 = vmul.f32 %v490_v23, %v2633_v50  ;;  %v2948_v59 = vmul.f32 0.5, %v2616_v45  ;;  %v528_v56 = vadd.f32 0.18741608, %v527_v19  ;;  %v539_v15 = vadd.f32 0.4994258, %v538_v43 }
 0x117   :  { %v986_v18 = vmul.f32 %v970_v10, %v298_v42  ;;  %v504_v2 = vsub.f32 1.0, %v503_v9  ;;  %2103 = vrcp.f32 %v2943_v44  ;;  %v844_v47 = vadd.f32 0.0036580483, %v843_v40 }
 0x118   :  { %v511_v28 = vand.u32 2147483647, %v2899_v39  ;;  %v513_v0 = vand.u32 2147483648, %v2899_v39  ;;  %v810_v6 = vadd.f32 1.1283791, %v809_v26  ;;  %v540_v29 = vmul.f32 %v539_v15, %v2704_v51 }
 0x119   :  { %1057 = vmatmul.f32.gmra.mxu3 %v986_v18  ;;  %v505_v31 = vmul.f32 %v2102_v3, %v504_v2  ;;  %vm508_vm6 = vweird.f32 %v2102_v3  ;;  %v853_v50 = vadd.f32 0.001143296, %v852_v48  ;;  %v573_v45 = vadd.f32 0.001143296, %v572_v13 }
 0x11a   :  { %vm507_vm7 = vweird.f32 %v2899_v39  ;;  %v831_v4 = vand.u32 2147483647, %v2943_v44  ;;  %v833_v32 = vand.u32 2147483648, %v2943_v44  ;;  %v2957_v12 = vadd.f32 1.0, %v540_v29 }
 0x11b   :  { %v506_v14 = vadd.f32 %v2102_v3, %v505_v31  ;;  %v529_v58 = vmul.f32 %v528_v56, %v2704_v51  ;;  %v845_v22 = vmul.f32 %v844_v47, %v2743_v62  ;;  %v854_v8 = vmul.f32 %v853_v50, %v2743_v62  ;;  %vm509_vm8 = vmor %vm507_vm7, %vm508_vm6 }
 0x11c   :  { %vm512_vm9 = vcmp.eq.f32.partialorder %v511_v28, 8.507059e+37  ;;  %v514_v24 = vor.u32 1.1754944e-38, %v513_v0  ;;  %2105 = vrcp.f32 %v2957_v12  ;;  %v574_v39 = vmul.f32 %v573_v45, %v2706_v61 }
 0x11d   :  { %v2104_v42 = vpop.eup %2103  ;;  %v510_v46 = vsel %vm509_vm8, %v2102_v3, %v506_v14  ;;  %v811_v23 = vmul.f32 %v810_v6, %v2636_v41  ;;  %vm827_vm10 = vweird.f32 %v2943_v44  ;;  %v855_v53 = vadd.f32 0.014752088, %v854_v8  ;;  %v1088_v14 = vld [vmem:[%s3485_s2 + $0x78] sm:$0xff] }
 0x11e   :  { %v515_v49 = vsel %vm512_vm9, %v514_v24, %v510_v46  ;;  %v823_v51 = vmul.f32 %v2104_v42, %v2943_v44  ;;  %vm2967_vm11 = vcmp.eq.f32.partialorder %v831_v4, 8.507059e+37  ;;  %v834_v16 = vor.u32 1.1754944e-38, %v833_v32  ;;  %v2991_v32 = vld [vmem:[%s3486_s3 + $0x40] sm:$0xff]  ;;  %v3006_v24 = vld [vmem:[%s3486_s3 + $0x28] sm:$0xff]  ;;  %1166 = vperm.xlu0 %2056, %v1088_v14  }
 0x11f   :  { %v516_v60 = vmul.f32 %v515_v49, %v491_v55  ;;  %v530_v26 = vadd.f32 1.1283791, %v529_v58  ;;  %v846_v38 = vadd.f32 0.05243302, %v845_v22  ;;  %v856_v19 = vmul.f32 %v855_v53, %v2743_v62  ;;  %v1081_v44 = vld [vmem:[%s3485_s2 + $0x40] sm:$0xff]  ;;  %1503 = vmatpush.msra.mxu0 %v2991_v32 }
 0x120   :  { %v824_v43 = vsub.f32 1.0, %v823_v51  ;;  %v553_v3 = vand.u32 2147483648, %v2957_v12  ;;  %v575_v41 = vadd.f32 0.014752088, %v574_v39  ;;  %v881_v40 = vmul.f32 2.1237322e-06, %v2752_v17  ;;  %1131 = vperm.xlu2 %2058, %v1081_v44  }
 0x121   :  { %v1978_v48 = vclamps-f32 %v516_v60, 1.0  ;;  %vm828_vm12 = vweird.f32 %v2104_v42  ;;  %v857_v10 = vadd.f32 0.112945676, %v856_v19  ;;  %v892_v9 = vmul.f32 3.8918573e-05, %v2752_v17  ;;  %1504 = vmatpush.msra.mxu0 %v3006_v24 }
 0x122   :  { %v2106_v13 = vpop.eup %2105  ;;  %v825_v56 = vmul.f32 %v2104_v42, %v824_v43  ;;  %vm547_vm13 = vweird.f32 %v2957_v12  ;;  %v576_v55 = vmul.f32 %v575_v41, %v2706_v61  ;;  %v882_v15 = vadd.f32 0.00028619796, %v881_v40  ;;  %vm2982_vm14 = vmor %vm827_vm10, %vm828_vm12 }
 0x123   :  { %v963_v18 = vadd.f32 1.0, %v1978_v48  ;;  %v543_v2 = vmul.f32 %v2106_v13, %v2957_v12  ;;  %v551_v47 = vand.u32 2147483647, %v2957_v12  ;;  %v847_v28 = vmul.f32 %v846_v38, %v2743_v62 }
 0x124   :  { %v826_v0 = vadd.f32 %v2104_v42, %v825_v56  ;;  %v554_v29 = vor.u32 1.1754944e-38, %v553_v3  ;;  %v858_v31 = vmul.f32 %v857_v10, %v2743_v62  ;;  %v577_v50 = vadd.f32 0.112945676, %v576_v55  ;;  %v2191_v55 = vld [vmem:[%s3483_s0] sm:$0xff] }
 0x125   :  { %v979_v45 = vmul.f32 %v963_v18, %v2934_v63  ;;  %v544_v4 = vsub.f32 1.0, %v543_v2  ;;  %v883_v58 = vmul.f32 %v882_v15, %v2752_v17  ;;  %v893_v22 = vadd.f32 0.001143296, %v892_v9 }
 0x126   :  { %v830_v63 = vsel %vm2982_vm14, %v2104_v42, %v826_v0  ;;  %v859_v8 = vadd.f32 0.4994258, %v858_v31  ;;  %v578_v39 = vmul.f32 %v577_v50, %v2706_v61  ;;  %v601_v46 = vmul.f32 2.1237322e-06, %v2910_v37  ;;  %v3015_v42 = vld [vmem:[%s3486_s3 + $0x10] sm:$0xff] }
 0x127   :  { %1036 = vmatmul.f32.gmra.mxu1 %v979_v45  ;;  %v835_v53 = vsel %vm2967_vm11, %v834_v16, %v830_v63  ;;  %v545_v49 = vmul.f32 %v2106_v13, %v544_v4  ;;  %vm548_vm15 = vweird.f32 %v2106_v13  ;;  %v894_v51 = vmul.f32 %v893_v22, %v2752_v17  ;;  %1505 = vmatpush.msra.mxu0 %v3015_v42 }
 0x128   :  { %v836_v60 = vmul.f32 %v835_v53, %v811_v23  ;;  %v848_v38 = vadd.f32 0.18741608, %v847_v28  ;;  %v860_v19 = vmul.f32 %v859_v8, %v2743_v62  ;;  %v579_v43 = vadd.f32 0.4994258, %v578_v39  ;;  %vm549_vm2 = vmor %vm547_vm13, %vm548_vm15  ;;  %1990 = vmatmul.msk.f32.vlgmr.msra.gmra.mxu0 %vm79_vm0, %v2191_v55 }
 0x129   :  { %v546_v3 = vadd.f32 %v2106_v13, %v545_v49  ;;  %v884_v36 = vadd.f32 0.0036580483, %v883_v58  ;;  %v895_v16 = vadd.f32 0.014752088, %v894_v51  ;;  %v612_v41 = vmul.f32 3.8918573e-05, %v2910_v37 }
 0x12a   :  { %v1986_v40 = vclamps-f32 %v836_v60, 1.0  ;;  %v3023_v48 = vadd.f32 1.0, %v860_v19  ;;  %v580_v23 = vmul.f32 %v579_v43, %v2706_v61  ;;  %v602_v10 = vadd.f32 0.00028619796, %v601_v46 }
 0x12b   :  { %v531_v9 = vmul.f32 %v530_v26, %v2663_v20  ;;  %v550_v56 = vsel %vm549_vm2, %v2106_v13, %v546_v3  ;;  %vm552_vm3 = vcmp.eq.f32.partialorder %v551_v47, 8.507059e+37  ;;  %v896_v12 = vmul.f32 %v895_v16, %v2752_v17 }
 0x12c   :  { %v971_v15 = vadd.f32 1.0, %v1986_v40  ;;  %v555_v18 = vsel %vm552_vm3, %v554_v29, %v550_v56  ;;  %v849_v2 = vmul.f32 %v848_v38, %v2743_v62  ;;  %2107 = vrcp.f32 %v3023_v48 }
 0x12d   :  { %v556_v28 = vmul.f32 %v555_v18, %v531_v9  ;;  %v3035_v0 = vadd.f32 1.0, %v580_v23  ;;  %v885_v20 = vmul.f32 %v884_v36, %v2752_v17  ;;  %v613_v26 = vadd.f32 0.001143296, %v612_v41 }
 0x12e   :  { %v569_v13 = vmul.f32 %v2907_v33, %v2706_v61  ;;  %v987_v47 = vmul.f32 %v971_v15, %v2948_v59  ;;  %v897_v6 = vadd.f32 0.112945676, %v896_v12  ;;  %v603_v31 = vmul.f32 %v602_v10, %v2910_v37 }
 0x12f   :  { %v3043_v29 = vmin.f32 %v2930_v7, 16.0  ;;  %v1979_v62 = vclamps-f32 %v556_v28, 1.0  ;;  %2109 = vrcp.f32 %v3035_v0  ;;  %v292_v50 = vmul.f32 0.5, %v2619_v30  ;;  %v1086_v7 = vld [vmem:[%s3485_s2 + $0x68] sm:$0xff] }
 0x130   :  { %1060 = vmatmul.f32.gmra.mxu3 %v987_v47  ;;  %v850_v45 = vadd.f32 1.1283791, %v849_v2  ;;  %v886_v44 = vadd.f32 0.05243302, %v885_v20  ;;  %v898_v14 = vmul.f32 %v897_v6, %v2752_v17  ;;  %v614_v61 = vmul.f32 %v613_v26, %v2910_v37  ;;  %1156 = vperm.xlu1 %2057, %v1086_v7   ;;  %v2192_v30 = vld [vmem:[%s3483_s0 + $0x8] sm:$0xff] }
 0x131   :  { %v964_v4 = vadd.f32 1.0, %v1979_v62  ;;  %v570_v59 = vadd.f32 1.1283791, %v569_v13  ;;  %v604_v58 = vadd.f32 0.0036580483, %v603_v31  ;;  %1991 = vmatmul.msk.f32.gmra.mxu0 %vm79_vm0, %v2192_v30  ;;  %v873_v49 = vand.u32 2147483648, %v3023_v48 }
 0x132   :  { %v2108_v33 = vpop.eup %2107  ;;  %v899_v8 = vadd.f32 0.4994258, %v898_v14  ;;  %v921_v39 = vmul.f32 2.1237322e-06, %v3043_v29  ;;  %v851_v46 = vmul.f32 %v850_v45, %v2666_v52  ;;  %v871_v53 = vand.u32 2147483647, %v3023_v48 }
 0x133   :  { %v980_v22 = vmul.f32 %v964_v4, %v292_v50  ;;  %v863_v63 = vmul.f32 %v2108_v33, %v3023_v48  ;;  %v615_v51 = vadd.f32 0.014752088, %v614_v61  ;;  %v887_v19 = vmul.f32 %v886_v44, %v2752_v17 }
 0x134   :  { %v900_v43 = vmul.f32 %v899_v8, %v2752_v17  ;;  %v932_v3 = vmul.f32 3.8918573e-05, %v3043_v29  ;;  %vm867_vm4 = vweird.f32 %v3023_v48  ;;  %vm868_vm5 = vweird.f32 %v2108_v33 }
 0x135   :  { %v2110_v60 = vpop.eup %2109  ;;  %1039 = vmatmul.f32.gmra.mxu1 %v980_v22  ;;  %v864_v38 = vsub.f32 1.0, %v863_v63  ;;  %v605_v52 = vmul.f32 %v604_v58, %v2910_v37  ;;  %v616_v40 = vmul.f32 %v615_v51, %v2910_v37  ;;  %v922_v23 = vadd.f32 0.00028619796, %v921_v39  ;;  %vm869_vm7 = vmor %vm867_vm4, %vm868_vm5 }
 0x136   :  { %v583_v36 = vmul.f32 %v2110_v60, %v3035_v0  ;;  %v3067_v41 = vadd.f32 1.0, %v900_v43  ;;  %vm3070_vm6 = vcmp.eq.f32.partialorder %v871_v53, 8.507059e+37  ;;  %v593_v56 = vand.u32 2147483648, %v3035_v0 }
 0x137   :  { %v865_v16 = vmul.f32 %v2108_v33, %v864_v38  ;;  %v933_v55 = vadd.f32 0.001143296, %v932_v3  ;;  %v874_v15 = vor.u32 1.1754944e-38, %v873_v49  ;;  %v888_v18 = vadd.f32 0.18741608, %v887_v19 }
 0x138   :  { %v584_v9 = vsub.f32 1.0, %v583_v36  ;;  %2111 = vrcp.f32 %v3067_v41  ;;  %vm588_vm8 = vweird.f32 %v2110_v60  ;;  %v591_v28 = vand.u32 2147483647, %v3035_v0 }
 0x139   :  { %v866_v12 = vadd.f32 %v2108_v33, %v865_v16  ;;  %v617_v20 = vadd.f32 0.112945676, %v616_v40  ;;  %vm587_vm9 = vweird.f32 %v3035_v0  ;;  %v923_v13 = vmul.f32 %v922_v23, %v3043_v29  ;;  %v1084_v16 = vld [vmem:[%s3485_s2 + $0x58] sm:$0xff] }
 0x13a   :  { %v585_v2 = vmul.f32 %v2110_v60, %v584_v9  ;;  %v934_v47 = vmul.f32 %v933_v55, %v3043_v29  ;;  %v594_v62 = vor.u32 1.1754944e-38, %v593_v56  ;;  %v606_v50 = vadd.f32 0.05243302, %v605_v52  ;;  %vm589_vm10 = vmor %vm587_vm9, %vm588_vm8  ;;  %1146 = vperm.xlu2 %2058, %v1084_v16  }
 0x13b   :  { %v870_v26 = vsel %vm869_vm7, %v2108_v33, %v866_v12  ;;  %v889_v45 = vmul.f32 %v888_v18, %v2752_v17  ;;  %v618_v4 = vmul.f32 %v617_v20, %v2910_v37  ;;  %v293_v14 = vmul.f32 0.5, %v2652_v27 }
 0x13c   :  { %v875_v6 = vsel %vm3070_vm6, %v874_v15, %v870_v26  ;;  %v586_v31 = vadd.f32 %v2110_v60, %v585_v2  ;;  %v935_v44 = vadd.f32 0.014752088, %v934_v47  ;;  %v571_v0 = vmul.f32 %v570_v59, %v2669_v1 }
 0x13d   :  { %v876_v48 = vmul.f32 %v875_v6, %v851_v46  ;;  %vm592_vm11 = vcmp.eq.f32.partialorder %v591_v28, 8.507059e+37  ;;  %v619_v22 = vadd.f32 0.4994258, %v618_v4  ;;  %v924_v63 = vadd.f32 0.0036580483, %v923_v13 }
 0x13e   :  { %v590_v61 = vsel %vm589_vm10, %v2110_v60, %v586_v31  ;;  %v2112_v33 = vpop.eup %2111  ;;  %v300_v8 = vmul.f32 0.5, %v2649_v21  ;;  %v936_v17 = vmul.f32 %v935_v44, %v3043_v29  ;;  %v890_v53 = vadd.f32 1.1283791, %v889_v45 }
 0x13f   :  { %v1987_v7 = vclamps-f32 %v876_v48, 1.0  ;;  %v595_v58 = vsel %vm592_vm11, %v594_v62, %v590_v61  ;;  %v903_v39 = vmul.f32 %v2112_v33, %v3067_v41  ;;  %v607_v27 = vmul.f32 %v606_v50, %v2910_v37 }
 0x140   :  { %v596_v30 = vmul.f32 %v595_v58, %v571_v0  ;;  %v620_v1 = vmul.f32 %v619_v22, %v2910_v37  ;;  %v911_v51 = vand.u32 2147483647, %v3067_v41  ;;  %v937_v60 = vadd.f32 0.112945676, %v936_v17 }
 0x141   :  { %v972_v46 = vadd.f32 1.0, %v1987_v7  ;;  %v904_v49 = vsub.f32 1.0, %v903_v39  ;;  %v913_v19 = vand.u32 2147483648, %v3067_v41  ;;  %v925_v43 = vmul.f32 %v924_v63, %v3043_v29 }
 0x142   :  { %v1980_v59 = vclamps-f32 %v596_v30, 1.0  ;;  %v621_v21 = vadd.f32 1.0, %v620_v1  ;;  %vm908_vm12 = vweird.f32 %v2112_v33  ;;  %v938_v52 = vmul.f32 %v937_v60, %v3043_v29 }
 0x143   :  { %v988_v38 = vmul.f32 %v972_v46, %v300_v8  ;;  %v905_v36 = vmul.f32 %v2112_v33, %v904_v49  ;;  %vm907_vm13 = vweird.f32 %v3067_v41  ;;  %v914_v9 = vor.u32 1.1754944e-38, %v913_v19 }
 0x144   :  { %v965_v3 = vadd.f32 1.0, %v1980_v59  ;;  %2113 = vrcp.f32 %v621_v21  ;;  %v939_v10 = vadd.f32 0.4994258, %v938_v52  ;;  %vm909_vm14 = vmor %vm907_vm13, %vm908_vm12  ;;  %v608_v56 = vadd.f32 0.18741608, %v607_v27  ;;  %v1092_v52 = vpop.permute.xlu0 %1091 }
 0x145   :  { %1063 = vmatmul.f32.gmra.mxu3 %v988_v38  ;;  %v906_v23 = vadd.f32 %v2112_v33, %v905_v36  ;;  %v926_v55 = vadd.f32 0.05243302, %v925_v43  ;;  %v2059_v12 = vpack.i.bf16 %v2991_v32, %v2926_v5  ;;  %v891_v15 = vmul.f32 %v890_v53, %v2712_v35  ;;  %v1087_v5 = vld [vmem:[%s3485_s2 + $0x70] sm:$0xff] }
 0x146   :  { %v981_v40 = vmul.f32 %v965_v3, %v293_v14  ;;  %vm912_vm15 = vcmp.eq.f32.partialorder %v911_v51, 8.507059e+37  ;;  %v940_v2 = vmul.f32 %v939_v10, %v3043_v29  ;;  %v609_v13 = vmul.f32 %v608_v56, %v2910_v37  ;;  %1161 = vperm.xlu2 %2058, %v1087_v5  }
 0x147   :  { %v910_v18 = vsel %vm909_vm14, %v2112_v33, %v906_v23  ;;  %2060 = vrot.lane.b32.xlu1 %v2059_v12, %s2255_s8  ;;  %v927_v47 = vmul.f32 %v926_v55, %v3043_v29  ;;  %v301_v6 = vmul.f32 0.5, %v2697_v54  ;;  %v633_v48 = vand.u32 2147483648, %v621_v21 }
 0x148   :  { %1042 = vmatmul.f32.vlgmr.msrb.gmra.mxu2 %v981_v40  ;;  %v915_v28 = vsel %vm912_vm15, %v914_v9, %v910_v18  ;;  %v941_v20 = vadd.f32 1.0, %v940_v2  ;;  %v610_v50 = vadd.f32 1.1283791, %v609_v13  ;;  %v631_v37 = vand.u32 2147483647, %v621_v21 }
 0x149   :  { %v916_v41 = vmul.f32 %v915_v28, %v891_v15  ;;  %v928_v45 = vadd.f32 0.18741608, %v927_v47  ;;  %vm627_vm3 = vweird.f32 %v621_v21  ;;  %v634_v61 = vor.u32 1.1754944e-38, %v633_v48 }
 0x14a   :  { %v2114_v26 = vpop.eup %2113  ;;  %2115 = vrcp.f32 %v941_v20  ;;  %v611_v54 = vmul.f32 %v610_v50, %v2765_v34  ;;  %vm632_vm5 = vcmp.eq.f32.partialorder %v631_v37, 8.507059e+37  ;;  %v953_v30 = vand.u32 2147483648, %v941_v20 }
 0x14b   :  { %v1988_v35 = vclamps-f32 %v916_v41, 1.0  ;;  %v623_v32 = vmul.f32 %v2114_v26, %v621_v21  ;;  %vm628_vm2 = vweird.f32 %v2114_v26  ;;  %v929_v33 = vmul.f32 %v928_v45, %v3043_v29 }
 0x14c   :  { %vm629_vm4 = vmor %vm627_vm3, %vm628_vm2  ;;  %v951_v46 = vand.u32 2147483647, %v941_v20  ;;  %vm947_vm7 = vweird.f32 %v941_v20  ;;  %v294_v1 = vmul.f32 0.5, %v2694_v11  ;;  %v954_v29 = vor.u32 1.1754944e-38, %v953_v30  ;;  %v3121_v11 = vld [vmem:[%s3489_s6 + $0x1] ss:$0 sm:$0xff]  ;;  %v1102_v9 = vpop.permute.xlu1 %1101 }
 0x14d   :  { %v973_v31 = vadd.f32 1.0, %v1988_v35  ;;  %v624_v62 = vsub.f32 1.0, %v623_v32  ;;  %v930_v39 = vadd.f32 1.1283791, %v929_v33  ;;  %v302_v21 = vmul.f32 0.5, %v2756_v57  ;;  %v1097_v57 = vpop.permute.xlu0 %1096 }
 0x14e   :  { %vm952_vm9 = vcmp.eq.f32.partialorder %v951_v46, 8.507059e+37  ;;  %v1025_v36 = vpop.f32.mrf.mxu0  ;;  %vm1658_vm10 = vcmask 1041409   ;;  %vm1660_vm11 = vcmask 1042434   ;;  %vm1662_vm12 = vcmask 1043459  }
 0x14f   :  { %v989_v4 = vmul.f32 %v973_v31, %v301_v6  ;;  %v625_v44 = vmul.f32 %v2114_v26, %v624_v62  ;;  %v931_v34 = vmul.f32 %v930_v39, %v2774_v25  ;;  %v1026_v25 = vadd.f32 %v3121_v11, %v1025_v36 }
 0x150   :  { %v2116_v14 = vpop.eup %2115  ;;  %vm1664_vm13 = vcmask 1044484   ;;  %vm1666_vm14 = vcmask 1045509   ;;  %vm1668_vm15 = vcmask 1046534   ;;  %vm1670_vm2 = vcmask 1047559  }
 0x151   :  { %1066 = vmatmul.f32.gmra.mxu3 %v989_v4  ;;  %v626_v0 = vadd.f32 %v2114_v26, %v625_v44  ;;  %v943_v7 = vmul.f32 %v2116_v14, %v941_v20  ;;  %vm948_vm6 = vweird.f32 %v2116_v14  ;;  %v1169_v40 = vadd.f32 %v1092_v52, %v1026_v25 }
 0x152   :  { %vm949_vm8 = vmor %vm947_vm7, %vm948_vm6  ;;  %v3124_v16 = vpop.permute.xlu2 %1111 }
 0x153   :  { %v630_v58 = vsel %vm629_vm4, %v2114_v26, %v626_v0  ;;  %v944_v63 = vsub.f32 1.0, %v943_v7  ;;  %v1185_v23 = vsel %vm79_vm0, %v1169_v40, -inf }
 0x154   :  { %v635_v22 = vsel %vm632_vm5, %v634_v61, %v630_v58  ;;  %v1186_v10 = vrot.slane %v1185_v23, 4 }
 0x155   :  { %v636_v8 = vmul.f32 %v635_v22, %v611_v54  ;;  %v945_v17 = vmul.f32 %v2116_v14, %v944_v63  ;;  %v3130_v41 = vpop.permute.xlu0 %1121 }
 0x156   :  { %v1187_v55 = vmax.f32 %v1185_v23, %v1186_v10 }
 0x157   :  { %v1981_v53 = vclamps-f32 %v636_v8, 1.0  ;;  %v946_v27 = vadd.f32 %v2116_v14, %v945_v17  ;;  %v1049_v15 = vpop.f32.mrf.mxu3  ;;  %v1107_v28 = vpop.permute.xlu1 %1106 }
 0x158   :  { %v1188_v12 = vrot.slane %v1187_v55, 2  ;;  %v1050_v2 = vadd.f32 %v3121_v11, %v1049_v15 }
 0x159   :  { %v966_v59 = vadd.f32 1.0, %v1981_v53  ;;  %v950_v49 = vsel %vm949_vm8, %v2116_v14, %v946_v27 }
 0x15a   :  { %v955_v60 = vsel %vm952_vm9, %v954_v29, %v950_v49  ;;  %v1189_v26 = vmax.f32 %v1187_v55, %v1188_v12 }
 0x15b   :  { %v982_v51 = vmul.f32 %v966_v59, %v294_v1  ;;  %v956_v38 = vmul.f32 %v955_v60, %v931_v34 }
 0x15c   :  { %v1190_v32 = vrot.slane %v1189_v26, 1 }
 0x15d   :  { %1045 = vmatmul.f32.gmra.mxu2 %v982_v51  ;;  %v1989_v19 = vclamps-f32 %v956_v38, 1.0 }
 0x15e   :  { %v1028_v18 = vpop.f32.mrf.mxu0  ;;  %v1191_v48 = vmax.f32 %v1189_v26, %v1190_v32 }
 0x15f   :  { %v974_v43 = vadd.f32 1.0, %v1989_v19  ;;  %v1029_v20 = vadd.f32 %v3121_v11, %v1028_v18 }
 0x160   :  { %v1297_v7 = vsub.f32 %v1169_v40, %v1191_v48 }
 0x161   :  { %v990_v3 = vmul.f32 %v974_v43, %v302_v21  ;;  %v3133_v47 = vadd.f32 %v1097_v57, %v1029_v20  ;;  %v2064_v43 = vpack.i.bf16 %v3015_v42, %v3006_v24 }
 0x162   :  { %v1313_v39 = vmul.f32 1.442695, %v1297_v7 }
 0x163   :  { %1069 = vmatmul.f32.gmra.mxu3 %v990_v3  ;;  %v1192_v35 = vsel %vm79_vm0, %v3133_v47, -inf  ;;  %2065 = vrot.lane.b32.xlu2 %v2064_v43, %s2255_s8 }
 0x164   :  { %v1193_v6 = vrot.slane %v1192_v35, 4  ;;  %2117 = vpow2.f32 %v1313_v39 }
 0x166   :  { %v1194_v31 = vmax.f32 %v1192_v35, %v1193_v6 }
 0x168   :  { %v1137_v44 = vpop.permute.xlu0 %1136  ;;  %v1195_v14 = vrot.slane %v1194_v31, 2 }
 0x169   :  { %v3127_v56 = vpop.permute.xlu2 %1116  ;;  %v3142_v4 = vpop.permute.xlu1 %1126 }
 0x16a   :  { %v1196_v22 = vmax.f32 %v1194_v31, %v1195_v14  ;;  %v3167_v55 = vpop.eup %2117 }
 0x16b   :  { %v1345_v26 = vsel %vm79_vm0, %v3167_v55, 0.0 }
 0x16c   :  { %v1197_v59 = vrot.slane %v1196_v22, 1  ;;  %v1346_v48 = vrot.slane %v1345_v26, 4 }
 0x16e   :  { %v1198_v21 = vmax.f32 %v1196_v22, %v1197_v59 }
 0x170   :  { %v1298_v24 = vsub.f32 %v3133_v47, %v1198_v21 }
 0x172   :  { %v1315_v6 = vmul.f32 1.442695, %v1298_v24 }
 0x174   :  { %2119 = vpow2.f32 %v1315_v6 }
 0x17a   :  { %v1132_v13 = vpop.permute.xlu2 %1131  ;;  %v3191_v21 = vpop.eup %2119 }
 0x17b   :  { %v3135_v5 = vadd.f32 %v1132_v13, %v1050_v2 }
 0x17d   :  { %v1241_v62 = vsel %vm79_vm0, %v3135_v5, -inf  ;;  %v1142_v27 = vpop.permute.xlu1 %1141 }
 0x17e   :  { %v1242_v37 = vrot.slane %v1241_v62, 4  ;;  %v1031_v61 = vpop.f32.mrf.mxu0 }
 0x17f   :  { %v1032_v33 = vadd.f32 %v3121_v11, %v1031_v61 }
 0x180   :  { %v1052_v50 = vpop.f32.mrf.mxu3  ;;  %v1243_v58 = vmax.f32 %v1241_v62, %v1242_v37 }
 0x181   :  { %v1053_v45 = vadd.f32 %v3121_v11, %v1052_v50  ;;  %v3147_v54 = vadd.f32 %v1102_v9, %v1032_v33 }
 0x182   :  { %v1244_v1 = vrot.slane %v1243_v58, 2 }
 0x183   :  { %v3144_v0 = vadd.f32 %v1137_v44, %v1053_v45  ;;  %v1199_v8 = vsel %vm79_vm0, %v3147_v54, -inf }
 0x184   :  { %v1200_v17 = vrot.slane %v1199_v8, 4  ;;  %v1245_v19 = vmax.f32 %v1243_v58, %v1244_v1 }
 0x185   :  { %v1248_v63 = vsel %vm79_vm0, %v3144_v0, -inf }
 0x186   :  { %v1249_v53 = vrot.slane %v1248_v63, 4  ;;  %v1201_v49 = vmax.f32 %v1199_v8, %v1200_v17  ;;  %v1246_v12 = vrot.slane %v1245_v19, 1  ;;  %v1347_v17 = vadd.f32 %v1346_v48, %v1345_v26 }
 0x188   :  { %v1250_v60 = vmax.f32 %v1248_v63, %v1249_v53  ;;  %v1202_v36 = vrot.slane %v1201_v49, 2  ;;  %v1247_v32 = vmax.f32 %v1245_v19, %v1246_v12  ;;  %v1152_v63 = vpop.permute.xlu0 %1151  ;;  %v1348_v43 = vrot.slane %v1347_v17, 2 }
 0x189   :  { %v1352_v12 = vsel %vm79_vm0, %v3191_v21, 0.0 }
 0x18a   :  { %v1034_v34 = vpop.f32.mrf.mxu1  ;;  %v1251_v9 = vrot.slane %v1250_v60, 2  ;;  %v1203_v18 = vmax.f32 %v1201_v49, %v1202_v36  ;;  %v1305_v33 = vsub.f32 %v3135_v5, %v1247_v32  ;;  %v1353_v26 = vrot.slane %v1352_v12, 4 }
 0x18b   :  { %v1055_v30 = vpop.f32.mrf.mxu3  ;;  %v1035_v51 = vadd.f32 %v3121_v11, %v1034_v34 }
 0x18c   :  { %v1056_v46 = vadd.f32 %v3121_v11, %v1055_v30  ;;  %v1252_v13 = vmax.f32 %v1250_v60, %v1251_v9  ;;  %v1204_v62 = vrot.slane %v1203_v18, 1  ;;  %v1329_v49 = vmul.f32 1.442695, %v1305_v33 }
 0x18d   :  { %v3157_v38 = vadd.f32 %v1107_v28, %v1035_v51 }
 0x18e   :  { %v3154_v29 = vadd.f32 %v1142_v27, %v1056_v46  ;;  %v1253_v44 = vrot.slane %v1252_v13, 1  ;;  %v1205_v22 = vmax.f32 %v1203_v18, %v1204_v62  ;;  %2121 = vpow2.f32 %v1329_v49 }
 0x18f   :  { %v1206_v25 = vsel %vm79_vm0, %v3157_v38, -inf }
 0x190   :  { %v1255_v3 = vsel %vm79_vm0, %v3154_v29, -inf  ;;  %v1207_v40 = vrot.slane %v1206_v25, 4  ;;  %v1254_v53 = vmax.f32 %v1252_v13, %v1253_v44  ;;  %v1299_v51 = vsub.f32 %v3147_v54, %v1205_v22 }
 0x191   :  { %v1256_v57 = vrot.slane %v1255_v3, 4  ;;  %v1349_v54 = vadd.f32 %v1348_v43, %v1347_v17 }
 0x192   :  { %v1208_v42 = vmax.f32 %v1206_v25, %v1207_v40  ;;  %v1306_v25 = vsub.f32 %v3144_v0, %v1254_v53 }
 0x193   :  { %v1257_v35 = vmax.f32 %v1255_v3, %v1256_v57 }
 0x194   :  { %v1147_v10 = vpop.permute.xlu2 %1146  ;;  %v1209_v20 = vrot.slane %v1208_v42, 2  ;;  %v1331_v18 = vmul.f32 1.442695, %v1306_v25  ;;  %v3198_v62 = vpop.eup %2121 }
 0x195   :  { %v1258_v37 = vrot.slane %v1257_v35, 2 }
 0x196   :  { %v1210_v47 = vmax.f32 %v1208_v42, %v1209_v20 }
 0x197   :  { %v1259_v27 = vmax.f32 %v1257_v35, %v1258_v37  ;;  %v1350_v35 = vrot.slane %v1349_v54, 1  ;;  %v1401_v37 = vsel %vm79_vm0, %v3198_v62, 0.0 }
 0x198   :  { %v1211_v8 = vrot.slane %v1210_v47, 1 }
 0x199   :  { %v1351_v44 = vadd.f32 %v1350_v35, %v1349_v54 }
 0x19a   :  { %v1212_v60 = vmax.f32 %v1210_v47, %v1211_v8 }
 0x19c   :  { %v1058_v52 = vpop.f32.mrf.mxu3  ;;  %v1300_v57 = vsub.f32 %v3157_v38, %v1212_v60 }
 0x19d   :  { %v1059_v23 = vadd.f32 %v3121_v11, %v1058_v52  ;;  %v1260_v52 = vrot.slane %v1259_v27, 1 }
 0x19e   :  { %v1319_v13 = vmul.f32 1.442695, %v1300_v57 }
 0x19f   :  { %v3170_v2 = vadd.f32 %v1147_v10, %v1059_v23 }
 0x1a1   :  { %v1262_v50 = vsel %vm79_vm0, %v3170_v2, -inf }
 0x1a2   :  { %v1263_v7 = vrot.slane %v1262_v50, 4 }
 0x1a4   :  { %v1037_v15 = vpop.f32.mrf.mxu1  ;;  %v1264_v59 = vmax.f32 %v1262_v50, %v1263_v7 }
 0x1a5   :  { %v1038_v28 = vadd.f32 %v3121_v11, %v1037_v15  ;;  %v1261_v15 = vmax.f32 %v1259_v27, %v1260_v52  ;;  %v1157_v27 = vpop.permute.xlu1 %1156 }
 0x1a6   :  { %v1265_v40 = vrot.slane %v1264_v59, 2 }
 0x1a7   :  { %v3176_v31 = vadd.f32 %v3124_v16, %v1038_v28  ;;  %v1307_v38 = vsub.f32 %v3154_v29, %v1261_v15 }
 0x1a8   :  { %v1266_v28 = vmax.f32 %v1264_v59, %v1265_v40 }
 0x1a9   :  { %v1213_v45 = vsel %vm79_vm0, %v3176_v31, -inf  ;;  %v1333_v7 = vmul.f32 1.442695, %v1307_v38 }
 0x1aa   :  { %v1214_v14 = vrot.slane %v1213_v45, 4  ;;  %v1267_v47 = vrot.slane %v1266_v28, 1 }
 0x1ac   :  { %v1215_v30 = vmax.f32 %v1213_v45, %v1214_v14  ;;  %v1354_v45 = vadd.f32 %v1353_v26, %v1352_v12 }
 0x1ae   :  { %v1216_v1 = vrot.slane %v1215_v30, 2  ;;  %v1355_v8 = vrot.slane %v1354_v45, 2 }
 0x1b0   :  { %v1217_v19 = vmax.f32 %v1215_v30, %v1216_v1  ;;  %v1356_v60 = vadd.f32 %v1355_v8, %v1354_v45  ;;  %v3242_v45 = vld [vmem:[%s3489_s6 + $0x2] ss:$0 sm:$0xff] }
 0x1b2   :  { %v1040_v58 = vpop.f32.mrf.mxu1  ;;  %v1218_v23 = vrot.slane %v1217_v19, 1 }
 0x1b3   :  { %v1061_v61 = vpop.f32.mrf.mxu3  ;;  %v1041_v39 = vadd.f32 %v3121_v11, %v1040_v58 }
 0x1b4   :  { %v1062_v16 = vadd.f32 %v3121_v11, %v1061_v61  ;;  %v1219_v20 = vmax.f32 %v1217_v19, %v1218_v23 }
 0x1b5   :  { %v1174_v34 = vadd.f32 %v3127_v56, %v1041_v39  ;;  %v1317_v56 = vmul.f32 1.442695, %v1299_v51 }
 0x1b6   :  { %v3185_v46 = vadd.f32 %v1152_v63, %v1062_v16  ;;  %v1301_v50 = vsub.f32 %v3176_v31, %v1219_v20  ;;  %v1268_v16 = vmax.f32 %v1266_v28, %v1267_v47  ;;  %v1402_v63 = vrot.slane %v1401_v37, 4 }
 0x1b7   :  { %v1220_v36 = vsel %vm79_vm0, %v1174_v34, -inf  ;;  %2123 = vpow2.f32 %v1317_v56 }
 0x1b8   :  { %v1269_v5 = vsel %vm79_vm0, %v3185_v46, -inf  ;;  %v1221_v9 = vrot.slane %v1220_v36, 4  ;;  %2125 = vpow2.f32 %v1331_v18  ;;  %v1321_v58 = vmul.f32 1.442695, %v1301_v50 }
 0x1b9   :  { %v1270_v3 = vrot.slane %v1269_v5, 4  ;;  %2127 = vpow2.f32 %v1319_v13  ;;  %v1403_v51 = vadd.f32 %v1402_v63, %v1401_v37 }
 0x1ba   :  { %v1222_v42 = vmax.f32 %v1220_v36, %v1221_v9  ;;  %2129 = vrcp.f32 %v1351_v44 }
 0x1bb   :  { %v1271_v10 = vmax.f32 %v1269_v5, %v1270_v3  ;;  %2131 = vpow2.f32 %v1333_v7  ;;  %v1308_v5 = vsub.f32 %v3170_v2, %v1268_v16 }
 0x1bc   :  { %v1223_v0 = vrot.slane %v1222_v42, 2  ;;  %2133 = vpow2.f32 %v1321_v58 }
 0x1bd   :  { %v1272_v24 = vrot.slane %v1271_v10, 2  ;;  %v3204_v33 = vpop.eup %2123 }
 0x1be   :  { %v1224_v6 = vmax.f32 %v1222_v42, %v1223_v0  ;;  %v3207_v30 = vpop.eup %2125  ;;  %v1359_v39 = vsel %vm79_vm0, %v3204_v33, 0.0  ;;  %v1357_v42 = vrot.slane %v1356_v60, 1 }
 0x1bf   :  { %v1273_v32 = vmax.f32 %v1271_v10, %v1272_v24  ;;  %v3211_v53 = vpop.eup %2127  ;;  %v1408_v19 = vsel %vm79_vm0, %v3207_v30, 0.0  ;;  %v1360_v43 = vrot.slane %v1359_v39, 4  ;;  %v1335_v10 = vmul.f32 1.442695, %v1308_v5 }
 0x1c0   :  { %v1225_v48 = vrot.slane %v1224_v6, 1  ;;  %v1366_v3 = vsel %vm79_vm0, %v3211_v53, 0.0  ;;  %v2130_v40 = vpop.eup %2129  ;;  %v1409_v23 = vrot.slane %v1408_v19, 4  ;;  %v1404_v24 = vrot.slane %v1403_v51, 2 }
 0x1c1   :  { %v1274_v14 = vrot.slane %v1273_v32, 1  ;;  %v3229_v56 = vpop.eup %2131  ;;  %v1367_v57 = vrot.slane %v1366_v3, 4  ;;  %v1361_v15 = vadd.f32 %v1360_v43, %v1359_v39  ;;  %v1358_v50 = vadd.f32 %v1357_v42, %v1356_v60 }
 0x1c2   :  { %v1226_v61 = vmax.f32 %v1224_v6, %v1225_v48  ;;  %v1410_v20 = vadd.f32 %v1409_v23, %v1408_v19  ;;  %v1415_v0 = vsel %vm79_vm0, %v3229_v56, 0.0  ;;  %v1405_v47 = vadd.f32 %v1404_v24, %v1403_v51 }
 0x1c3   :  { %v1275_v17 = vmax.f32 %v1273_v32, %v1274_v14  ;;  %v1368_v13 = vadd.f32 %v1367_v57, %v1366_v3  ;;  %v1362_v48 = vrot.slane %v1361_v15, 2  ;;  %v1473_v44 = vmul.f32 %v2130_v40, %v3167_v55 }
 0x1c4   :  { %v1302_v22 = vsub.f32 %v1174_v34, %v1226_v61  ;;  %v1411_v7 = vrot.slane %v1410_v20, 2  ;;  %v1416_v16 = vrot.slane %v1415_v0, 4  ;;  %v1406_v55 = vrot.slane %v1405_v47, 1 }
 0x1c5   :  { %v1309_v36 = vsub.f32 %v3185_v46, %v1275_v17  ;;  %v3231_v46 = vpop.eup %2133  ;;  %v1369_v63 = vrot.slane %v1368_v13, 2 }
 0x1c6   :  { %v1323_v1 = vmul.f32 1.442695, %v1302_v22  ;;  %v1373_v35 = vsel %vm79_vm0, %v3231_v46, 0.0  ;;  %v1162_v22 = vpop.permute.xlu2 %1161  ;;  %v1412_v43 = vadd.f32 %v1411_v7, %v1410_v20  ;;  %v1417_v3 = vadd.f32 %v1416_v16, %v1415_v0 }
 0x1c7   :  { %v1374_v58 = vrot.slane %v1373_v35, 4 }
 0x1c8   :  { %v1064_v29 = vpop.f32.mrf.mxu3  ;;  %2135 = vpow2.f32 %v1323_v1  ;;  %v1363_v1 = vadd.f32 %v1362_v48, %v1361_v15  ;;  %v1413_v15 = vrot.slane %v1412_v43, 1  ;;  %v1418_v20 = vrot.slane %v1417_v3, 2 }
 0x1c9   :  { %v1065_v31 = vadd.f32 %v3121_v11, %v1064_v29  ;;  %2137 = vpow2.f32 %v1335_v10 }
 0x1ca   :  { %v1364_v57 = vrot.slane %v1363_v1, 1  ;;  %v1414_v16 = vadd.f32 %v1413_v15, %v1412_v43 }
 0x1cb   :  { %v1043_v59 = vpop.f32.mrf.mxu2  ;;  %v3214_v34 = vadd.f32 %v1157_v27, %v1065_v31  ;;  %v1507_v31 = vpop.f32.mrf.mxu0 }
 0x1cc   :  { %v1044_v49 = vadd.f32 %v3121_v11, %v1043_v59  ;;  %v3253_v59 = vadd.f32 %v3242_v45, %v1507_v31 }
 0x1cd   :  { %v1276_v25 = vsel %vm79_vm0, %v3214_v34, -inf }
 0x1ce   :  { %v3225_v2 = vadd.f32 %v3130_v41, %v1044_v49  ;;  %v1277_v52 = vrot.slane %v1276_v25, 4  ;;  %v1337_v41 = vmul.f32 1.442695, %v1309_v36  ;;  %v3235_v26 = vpop.eup %2135  ;;  %v1375_v36 = vadd.f32 %v1374_v58, %v1373_v35 }
 0x1cf   :  { %v1380_v29 = vsel %vm79_vm0, %v3235_v26, 0.0  ;;  %v3250_v27 = vpop.eup %2137  ;;  %v3273_v58 = vadd.f32 %v1418_v20, %v1417_v3 }
 0x1d0   :  { %v1227_v9 = vsel %vm79_vm0, %v3225_v2, -inf  ;;  %v1278_v54 = vmax.f32 %v1276_v25, %v1277_v52  ;;  %2139 = vpow2.f32 %v1337_v41  ;;  %v1381_v5 = vrot.slane %v1380_v29, 4 }
 0x1d1   :  { %v1228_v12 = vrot.slane %v1227_v9, 4  ;;  %2141 = vrcp.f32 %v1358_v50  ;;  %v1370_v52 = vadd.f32 %v1369_v63, %v1368_v13  ;;  %v1422_v40 = vsel %vm79_vm0, %v3250_v27, 0.0 }
 0x1d2   :  { %v1279_v18 = vrot.slane %v1278_v54, 2  ;;  %v1423_v41 = vrot.slane %v1422_v40, 4 }
 0x1d3   :  { %v1229_v28 = vmax.f32 %v1227_v9, %v1228_v12  ;;  %v1407_v9 = vadd.f32 %v1406_v55, %v1405_v47  ;;  %v1382_v12 = vadd.f32 %v1381_v5, %v1380_v29  ;;  %v1371_v0 = vrot.slane %v1370_v52, 1 }
 0x1d4   :  { %v1280_v32 = vmax.f32 %v1278_v54, %v1279_v18  ;;  %v1067_v38 = vpop.f32.mrf.mxu3  ;;  %v1376_v18 = vrot.slane %v1375_v36, 2  ;;  %v1365_v47 = vadd.f32 %v1364_v57, %v1363_v1  ;;  %v1424_v48 = vadd.f32 %v1423_v41, %v1422_v40  ;;  %v1167_v40 = vpop.permute.xlu0 %1166 }
 0x1d5   :  { %v1230_v6 = vrot.slane %v1229_v28, 2  ;;  %v1068_v61 = vadd.f32 %v3121_v11, %v1067_v38  ;;  %v1383_v50 = vrot.slane %v1382_v12, 2 }
 0x1d6   :  { %v1281_v37 = vrot.slane %v1280_v32, 1  ;;  %v3258_v19 = vpop.eup %2139  ;;  %v1425_v1 = vrot.slane %v1424_v48, 2 }
 0x1d7   :  { %v1231_v14 = vmax.f32 %v1229_v28, %v1230_v6  ;;  %v3248_v17 = vadd.f32 %v1162_v22, %v1068_v61  ;;  %v1429_v54 = vsel %vm79_vm0, %v3258_v19, 0.0  ;;  %v2142_v42 = vpop.eup %2141 }
 0x1d8   :  { %v1282_v8 = vmax.f32 %v1280_v32, %v1281_v37  ;;  %v1430_v35 = vrot.slane %v1429_v54, 4  ;;  %v1474_v38 = vmul.f32 %v2142_v42, %v3191_v21  ;;  %v1377_v37 = vadd.f32 %v1376_v18, %v1375_v36 }
 0x1d9   :  { %v1232_v39 = vrot.slane %v1231_v14, 1  ;;  %v1283_v60 = vsel %vm79_vm0, %v3248_v17, -inf }
 0x1da   :  { %v1310_v49 = vsub.f32 %v3214_v34, %v1282_v8  ;;  %v1284_v25 = vrot.slane %v1283_v60, 4  ;;  %v1431_v29 = vadd.f32 %v1430_v35, %v1429_v54  ;;  %v1378_v5 = vrot.slane %v1377_v37, 1 }
 0x1db   :  { %v1233_v51 = vmax.f32 %v1231_v14, %v1232_v39 }
 0x1dc   :  { %v1339_v23 = vmul.f32 1.442695, %v1310_v49  ;;  %v1285_v34 = vmax.f32 %v1283_v60, %v1284_v25 }
 0x1dd   :  { %v1303_v10 = vsub.f32 %v3225_v2, %v1233_v51  ;;  %v1513_v2 = vmul.f32 %v3253_v59, %v1473_v44  ;;  %v1372_v44 = vadd.f32 %v1371_v0, %v1370_v52 }
 0x1de   :  { %2143 = vpow2.f32 %v1339_v23  ;;  %v1286_v28 = vrot.slane %v1285_v34, 2  ;;  %v1432_v23 = vrot.slane %v1431_v29, 2 }
 0x1df   :  { %v1325_v24 = vmul.f32 1.442695, %v1303_v10  ;;  %v1529_v22 = vsel %vm79_vm0, %v1513_v2, 0.0 }
 0x1e0   :  { %v1046_v13 = vpop.f32.mrf.mxu2  ;;  %v1287_v32 = vmax.f32 %v1285_v34, %v1286_v28  ;;  %v1530_v42 = vrot.slane %v1529_v22, 4  ;;  %v1433_v0 = vadd.f32 %v1432_v23, %v1431_v29 }
 0x1e1   :  { %2145 = vpow2.f32 %v1325_v24  ;;  %v1047_v6 = vadd.f32 %v3121_v11, %v1046_v13  ;;  %v1426_v24 = vadd.f32 %v1425_v1, %v1424_v48 }
 0x1e2   :  { %2147 = vrcp.f32 %v1407_v9  ;;  %v1288_v14 = vrot.slane %v1287_v32, 1  ;;  %v1514_v9 = vmul.f32 %v3253_v59, %v1474_v38  ;;  %v1531_v48 = vadd.f32 %v1530_v42, %v1529_v22 }
 0x1e3   :  { %v3269_v61 = vadd.f32 %v3142_v4, %v1047_v6  ;;  %2149 = vrcp.f32 %v1365_v47  ;;  %v1384_v4 = vadd.f32 %v1383_v50, %v1382_v12  ;;  %v1420_v47 = vrot.slane %v3273_v58, 1 }
 0x1e4   :  { %v3271_v7 = vpop.eup %2143  ;;  %v1289_v63 = vmax.f32 %v1287_v32, %v1288_v14  ;;  %2151 = vrcp.f32 %v1372_v44  ;;  %v1536_v6 = vsel %vm79_vm0, %v1514_v9, 0.0  ;;  %v1434_v29 = vrot.slane %v1433_v0, 1 }
 0x1e5   :  { %v1436_v21 = vsel %vm79_vm0, %v3271_v7, 0.0  ;;  %v1234_v8 = vsel %vm79_vm0, %v3269_v61, -inf  ;;  %v1385_v57 = vrot.slane %v1384_v4, 1  ;;  %v1421_v22 = vadd.f32 %v1420_v47, %v3273_v58 }
 0x1e6   :  { %v1437_v39 = vrot.slane %v1436_v21, 4  ;;  %v1235_v55 = vrot.slane %v1234_v8, 4  ;;  %v1311_v51 = vsub.f32 %v3248_v17, %v1289_v63  ;;  %v1070_v60 = vpop.f32.mrf.mxu3  ;;  %v1379_v17 = vadd.f32 %v1378_v5, %v1377_v37 }
 0x1e7   :  { %v3280_v31 = vpop.eup %2145  ;;  %v1071_v52 = vadd.f32 %v3121_v11, %v1070_v60  ;;  %v1386_v2 = vadd.f32 %v1385_v57, %v1384_v4  ;;  %v1427_v37 = vrot.slane %v1426_v24, 1 }
 0x1e8   :  { %v1387_v49 = vsel %vm79_vm0, %v3280_v31, 0.0  ;;  %v2148_v43 = vpop.eup %2147  ;;  %v1438_v3 = vadd.f32 %v1437_v39, %v1436_v21  ;;  %v1236_v25 = vmax.f32 %v1234_v8, %v1235_v55  ;;  %v1341_v10 = vmul.f32 1.442695, %v1311_v51  ;;  %v1510_v51 = vpop.f32.mrf.mxu0 }
 0x1e9   :  { %v1388_v36 = vrot.slane %v1387_v49, 4  ;;  %v3287_v12 = vadd.f32 %v1167_v40, %v1071_v52  ;;  %v2150_v15 = vpop.eup %2149  ;;  %v3292_v20 = vmul.f32 %v2148_v43, %v3198_v62  ;;  %v1537_v8 = vrot.slane %v1536_v6, 4 }
 0x1ea   :  { %v1237_v54 = vrot.slane %v1236_v25, 2  ;;  %2153 = vpow2.f32 %v1341_v10  ;;  %v1439_v41 = vrot.slane %v1438_v3, 2  ;;  %v2152_v38 = vpop.eup %2151  ;;  %v1428_v43 = vadd.f32 %v1427_v37, %v1426_v24 }
 0x1eb   :  { %v1389_v34 = vadd.f32 %v1388_v36, %v1387_v49  ;;  %v1290_v11 = vsel %vm79_vm0, %v3287_v12, -inf  ;;  %2155 = vrcp.f32 %v1414_v16  ;;  %v1475_v16 = vmul.f32 %v2150_v15, %v3204_v33 }
 0x1ec   :  { %v1238_v28 = vmax.f32 %v1236_v25, %v1237_v54  ;;  %v1291_v13 = vrot.slane %v1290_v11, 4  ;;  %2157 = vrcp.f32 %v1379_v17  ;;  %v1440_v14 = vadd.f32 %v1439_v41, %v1438_v3  ;;  %v2061_v17 = vpop.permute.xlu1 %2060 }
 0x1ed   :  { %v1390_v18 = vrot.slane %v1389_v34, 2  ;;  %2159 = vrcp.f32 %v1386_v2  ;;  %v1476_v5 = vmul.f32 %v2152_v38, %v3211_v53  ;;  %v1532_v36 = vrot.slane %v1531_v48, 2 }
 0x1ee   :  { %v1239_v32 = vrot.slane %v1238_v28, 1  ;;  %v1292_v50 = vmax.f32 %v1290_v11, %v1291_v13  ;;  %v1441_v33 = vrot.slane %v1440_v14, 1  ;;  %v1538_v23 = vadd.f32 %v1537_v8, %v1536_v6 }
 0x1ef   :  { %v1391_v35 = vadd.f32 %v1390_v18, %v1389_v34  ;;  %v1435_v10 = vadd.f32 %v1434_v29, %v1433_v0  ;;  %v1515_v58 = vmul.f32 %v3253_v59, %v1475_v16  ;;  %v1516_v57 = vmul.f32 %v3253_v59, %v1476_v5 }
 0x1f0   :  { %v1240_v21 = vmax.f32 %v1238_v28, %v1239_v32  ;;  %v3296_v62 = vpop.eup %2153  ;;  %v1293_v63 = vrot.slane %v1292_v50, 2  ;;  %v1442_v24 = vadd.f32 %v1441_v33, %v1440_v14  ;;  %v1533_v42 = vadd.f32 %v1532_v36, %v1531_v48 }
 0x1f1   :  { %v1392_v44 = vrot.slane %v1391_v35, 1  ;;  %v1443_v39 = vsel %vm79_vm0, %v3296_v62, 0.0  ;;  %v2156_v1 = vpop.eup %2155  ;;  %v2063_v18 = vunpack.i.h.bf16 %v2061_v17  ;;  %v2062_v28 = vunpack.i.l.bf16 %v2061_v17 }
 0x1f2   :  { %v1304_v55 = vsub.f32 %v3269_v61, %v1240_v21  ;;  %v1444_v49 = vrot.slane %v1443_v39, 4  ;;  %v1294_v60 = vmax.f32 %v1292_v50, %v1293_v63  ;;  %v2158_v25 = vpop.eup %2157  ;;  %v3305_v61 = vadd.f32 %v3242_v45, %v1510_v51 }
 0x1f3   :  { %v1393_v4 = vadd.f32 %v1392_v44, %v1391_v35  ;;  %v2160_v34 = vpop.eup %2159  ;;  %v1477_v54 = vmul.f32 %v2158_v25, %v3231_v46  ;;  %v1539_v45 = vrot.slane %v1538_v23, 2  ;;  %v1543_v11 = vsel %vm79_vm0, %v1515_v58, 0.0  ;;  %1711 = vmatpush.msra.mxu1 %v2062_v28 }
 0x1f4   :  { %v1327_v3 = vmul.f32 1.442695, %v1304_v55  ;;  %v1445_v52 = vadd.f32 %v1444_v49, %v1443_v39  ;;  %v1295_v40 = vrot.slane %v1294_v60, 1  ;;  %v1478_v13 = vmul.f32 %v2160_v34, %v3235_v26 }
 0x1f5   :  { %2161 = vrcp.f32 %v1393_v4  ;;  %v1550_v32 = vsel %vm79_vm0, %v1516_v57, 0.0  ;;  %v1517_v6 = vmul.f32 %v3253_v59, %v1477_v54  ;;  %v1521_v38 = vmul.f32 %v3305_v61, %v3292_v20  ;;  %1712 = vmatpush.msra.mxu1 %v2063_v18 }
 0x1f6   :  { %2163 = vpow2.f32 %v1327_v3  ;;  %v1446_v53 = vrot.slane %v1445_v52, 2  ;;  %v1296_v9 = vmax.f32 %v1294_v60, %v1295_v40  ;;  %v1540_v26 = vadd.f32 %v1539_v45, %v1538_v23  ;;  %v2066_v3 = vpop.permute.xlu2 %2065 }
 0x1f7   :  { %2165 = vrcp.f32 %v1421_v22  ;;  %v1544_v21 = vrot.slane %v1543_v11, 4  ;;  %v1551_v16 = vrot.slane %v1550_v32, 4  ;;  %v1482_v29 = vmul.f32 %v2156_v1, %v3207_v30 }
 0x1f8   :  { %2167 = vrcp.f32 %v1428_v43  ;;  %v1447_v15 = vadd.f32 %v1446_v53, %v1445_v52  ;;  %v1312_v41 = vsub.f32 %v3287_v12, %v1296_v9  ;;  %v1534_v12 = vrot.slane %v1533_v42, 1 }
 0x1f9   :  { %2169 = vrcp.f32 %v1435_v10  ;;  %v1518_v63 = vmul.f32 %v3253_v59, %v1478_v13  ;;  %v1557_v4 = vsel %vm79_vm0, %v1517_v6, 0.0  ;;  %v3326_v39 = vsel %vm79_vm0, %v1521_v38, 0.0 }
 0x1fa   :  { %v1448_v2 = vrot.slane %v1447_v15, 1  ;;  %v1343_v35 = vmul.f32 1.442695, %v1312_v41  ;;  %2171 = vrcp.f32 %v1442_v24  ;;  %v1535_v22 = vadd.f32 %v1534_v12, %v1533_v42 }
 0x1fb   :  { %v2162_v0 = vpop.eup %2161  ;;  %v1541_v5 = vrot.slane %v1540_v26, 1  ;;  %v1545_v1 = vadd.f32 %v1544_v21, %v1543_v11  ;;  %v1552_v60 = vadd.f32 %v1551_v16, %v1550_v32  ;;  %v1558_v36 = vrot.slane %v1557_v4, 4 }
 0x1fc   :  { %v3314_v46 = vpop.eup %2163  ;;  %v1449_v50 = vadd.f32 %v1448_v2, %v1447_v15  ;;  %2173 = vpow2.f32 %v1343_v35  ;;  %v1479_v14 = vmul.f32 %v2162_v0, %v3280_v31  ;;  %v1564_v25 = vsel %vm79_vm0, %v1518_v63, 0.0 }
 0x1fd   :  { %v2166_v47 = vpop.eup %2165  ;;  %v1394_v48 = vsel %vm79_vm0, %v3314_v46, 0.0  ;;  %v2068_v40 = vunpack.i.h.bf16 %v2066_v3  ;;  %v2067_v23 = vunpack.i.l.bf16 %v2066_v3  ;;  %v1542_v9 = vadd.f32 %v1541_v5, %v1540_v26 }
 0x1fe   :  { %v2168_v37 = vpop.eup %2167  ;;  %v1395_v44 = vrot.slane %v1394_v48, 4  ;;  %2175 = vrcp.f32 %v1449_v50  ;;  %v1483_v55 = vmul.f32 %v2166_v47, %v3229_v56  ;;  %v1519_v51 = vmul.f32 %v3253_v59, %v1479_v14 }
 0x1ff   :  { %v2170_v20 = vpop.eup %2169  ;;  %v1484_v31 = vmul.f32 %v2168_v37, %v3250_v27  ;;  %v1522_v56 = vmul.f32 %v3305_v61, %v1482_v29  ;;  %1713 = vmatpush.msra.mxu1 %v2067_v23  ;;  %v1546_v24 = vrot.slane %v1545_v1, 2  ;;  %v1553_v42 = vrot.slane %v1552_v60, 2 }
 0x200   :  { %v1396_v8 = vadd.f32 %v1395_v44, %v1394_v48  ;;  %v2172_v49 = vpop.eup %2171  ;;  %v1485_v33 = vmul.f32 %v2170_v20, %v3258_v19  ;;  %v1523_v57 = vmul.f32 %v3305_v61, %v1483_v55  ;;  %v1571_v19 = vsel %vm79_vm0, %v1519_v51, 0.0 }
 0x201   :  { %v1486_v58 = vmul.f32 %v2172_v49, %v3271_v7  ;;  %v1565_v15 = vrot.slane %v1564_v25, 4  ;;  %v1524_v41 = vmul.f32 %v3305_v61, %v1484_v31  ;;  %1714 = vmatpush.msra.mxu1 %v2068_v40  ;;  %v1559_v18 = vadd.f32 %v1558_v36, %v1557_v4 }
 0x202   :  { %v1397_v30 = vrot.slane %v1396_v8, 2  ;;  %v3331_v43 = vpop.eup %2173  ;;  %v1525_v7 = vmul.f32 %v3305_v61, %v1485_v33  ;;  %v1592_v28 = vsel %vm79_vm0, %v1522_v56, 0.0  ;;  %v1572_v11 = vrot.slane %v1571_v19, 4 }
 0x203   :  { %v1450_v27 = vsel %vm79_vm0, %v3331_v43, 0.0  ;;  %v1526_v13 = vmul.f32 %v3305_v61, %v1486_v58  ;;  %v1547_v2 = vadd.f32 %v1546_v24, %v1545_v1  ;;  %v1554_v6 = vadd.f32 %v1553_v42, %v1552_v60 }
 0x204   :  { %v1398_v52 = vadd.f32 %v1397_v30, %v1396_v8  ;;  %v2176_v10 = vpop.eup %2175  ;;  %v1451_v53 = vrot.slane %v1450_v27, 4  ;;  %v1566_v12 = vadd.f32 %v1565_v15, %v1564_v25  ;;  %v1606_v38 = vsel %vm79_vm0, %v1524_v41, 0.0 }
 0x205   :  { %v1487_v34 = vmul.f32 %v2176_v10, %v3296_v62  ;;  %v1599_v62 = vsel %vm79_vm0, %v1523_v57, 0.0  ;;  %v1560_v47 = vrot.slane %v1559_v18, 2  ;;  %v1593_v50 = vrot.slane %v1592_v28, 4 }
 0x206   :  { %v1399_v54 = vrot.slane %v1398_v52, 1  ;;  %v1452_v17 = vadd.f32 %v1451_v53, %v1450_v27  ;;  %v1600_v48 = vrot.slane %v1599_v62, 4  ;;  %v1613_v26 = vsel %vm79_vm0, %v1525_v7, 0.0 }
 0x207   :  { %v1527_v35 = vmul.f32 %v3305_v61, %v1487_v34  ;;  %v1573_v14 = vadd.f32 %v1572_v11, %v1571_v19  ;;  %v1659_v44 = vsel %vm1658_vm10, %v1542_v9, %v1535_v22  ;;  %v1620_v21 = vsel %vm79_vm0, %v1526_v13, 0.0 }
 0x208   :  { %v1400_v45 = vadd.f32 %v1399_v54, %v1398_v52  ;;  %v1453_v0 = vrot.slane %v1452_v17, 2  ;;  %v1548_v16 = vrot.slane %v1547_v2, 1  ;;  %v1586_v29 = vrot.slane %v3326_v39, 4 }
 0x209   :  { %v1607_v63 = vrot.slane %v1606_v38, 4  ;;  %v1627_v20 = vsel %vm79_vm0, %v1527_v35, 0.0  ;;  %v1555_v4 = vrot.slane %v1554_v6, 1  ;;  %v1567_v55 = vrot.slane %v1566_v12, 2 }
 0x20a   :  { %2177 = vrcp.f32 %v1400_v45  ;;  %v1454_v32 = vadd.f32 %v1453_v0, %v1452_v17  ;;  %v1614_v31 = vrot.slane %v1613_v26, 4  ;;  %v1561_v49 = vadd.f32 %v1560_v47, %v1559_v18 }
 0x20b   :  { %v1594_v51 = vadd.f32 %v1593_v50, %v1592_v28  ;;  %v1601_v30 = vadd.f32 %v1600_v48, %v1599_v62  ;;  %v1621_v1 = vrot.slane %v1620_v21, 4  ;;  %v1574_v22 = vrot.slane %v1573_v14, 2 }
 0x20c   :  { %v1455_v37 = vrot.slane %v1454_v32, 1  ;;  %v1628_v33 = vrot.slane %v1627_v20, 4  ;;  %v1549_v3 = vadd.f32 %v1548_v16, %v1547_v2  ;;  %v1587_v36 = vadd.f32 %v1586_v29, %v3326_v39 }
 0x20d   :  { %v1608_v25 = vadd.f32 %v1607_v63, %v1606_v38  ;;  %v1556_v52 = vadd.f32 %v1555_v4, %v1554_v6  ;;  %v1568_v27 = vadd.f32 %v1567_v55, %v1566_v12  ;;  %v1615_v40 = vadd.f32 %v1614_v31, %v1613_v26 }
 0x20e   :  { %v1456_v8 = vadd.f32 %v1455_v37, %v1454_v32  ;;  %v1562_v23 = vrot.slane %v1561_v49, 1  ;;  %v1595_v10 = vrot.slane %v1594_v51, 2  ;;  %v1622_v58 = vadd.f32 %v1621_v1, %v1620_v21 }
 0x20f   :  { %v1575_v53 = vadd.f32 %v1574_v22, %v1573_v14  ;;  %v1602_v9 = vrot.slane %v1601_v30, 2  ;;  %v1629_v57 = vadd.f32 %v1628_v33, %v1627_v20  ;;  %v1661_v34 = vsel %vm1660_vm11, %v1549_v3, %v1659_v44 }
 0x210   :  { %v2178_v5 = vpop.eup %2177  ;;  %2179 = vrcp.f32 %v1456_v8  ;;  %v1588_v54 = vrot.slane %v1587_v36, 2  ;;  %v1609_v39 = vrot.slane %v1608_v25, 2  ;;  %v1569_v17 = vrot.slane %v1568_v27, 1 }
 0x211   :  { %v1480_v60 = vmul.f32 %v2178_v5, %v3314_v46  ;;  %v1616_v42 = vrot.slane %v1615_v40, 2  ;;  %v1596_v45 = vadd.f32 %v1595_v10, %v1594_v51  ;;  %v1623_v18 = vrot.slane %v1622_v58, 2 }
 0x212   :  { %v1563_v7 = vadd.f32 %v1562_v23, %v1561_v49  ;;  %v1576_v28 = vrot.slane %v1575_v53, 1  ;;  %v1603_v11 = vadd.f32 %v1602_v9, %v1601_v30  ;;  %v1630_v0 = vrot.slane %v1629_v57, 2 }
 0x213   :  { %v1520_v56 = vmul.f32 %v3253_v59, %v1480_v60  ;;  %v1663_v59 = vsel %vm1662_vm12, %v1556_v52, %v1661_v34  ;;  %v1589_v2 = vadd.f32 %v1588_v54, %v1587_v36  ;;  %v1610_v35 = vadd.f32 %v1609_v39, %v1608_v25 }
 0x214   :  { %v1570_v32 = vadd.f32 %v1569_v17, %v1568_v27  ;;  %v1617_v6 = vadd.f32 %v1616_v42, %v1615_v40  ;;  %v1597_v38 = vrot.slane %v1596_v45, 1  ;;  %v1624_v47 = vadd.f32 %v1623_v18, %v1622_v58  ;;  %v2196_v18 = vld [vmem:[%s3486_s3 + $0x40] sm:$0xff] }
 0x215   :  { %v1578_v46 = vsel %vm79_vm0, %v1520_v56, 0.0  ;;  %v1577_v50 = vadd.f32 %v1576_v28, %v1575_v53  ;;  %v1604_v48 = vrot.slane %v1603_v11, 1  ;;  %v1631_v26 = vadd.f32 %v1630_v0, %v1629_v57  ;;  %v2082_v53 = vld [vmem:[%s3489_s6 + $0x3] ss:$0 sm:$0xff]  ;;  %v2197_v28 = vld [vmem:[%s3486_s3 + $0x28] sm:$0xff] }
 0x216   :  { %v1579_v19 = vrot.slane %v1578_v46, 4  ;;  %v2180_v24 = vpop.eup %2179  ;;  %v1590_v44 = vrot.slane %v1589_v2, 1  ;;  %v1611_v21 = vrot.slane %v1610_v35, 1  ;;  %v1618_v16 = vrot.slane %v1617_v6, 1  ;;  %v2193_v57 = vld [vmem:[%s3483_s0] sm:$0xff] }
 0x217   :  { %v1488_v15 = vmul.f32 %v2180_v24, %v3331_v43  ;;  %v1598_v8 = vadd.f32 %v1597_v38, %v1596_v45  ;;  %v1625_v4 = vrot.slane %v1624_v47, 1  ;;  %v1605_v31 = vadd.f32 %v1604_v48, %v1603_v11  ;;  %v2194_v24 = vld [vmem:[%s3483_s0 + $0x8] sm:$0xff]  ;;  %v2195_v45 = vld [vmem:[%s3486_s3 + $0x58] sm:$0xff]  ;;  %v2198_v11 = vld [vmem:[%s3486_s3 + $0x10] sm:$0xff] }
 0x218   :  { %v1580_v41 = vadd.f32 %v1579_v19, %v1578_v46  ;;  %v1632_v5 = vrot.slane %v1631_v26, 1  ;;  %v1591_v30 = vadd.f32 %v1590_v44, %v1589_v2  ;;  %v1612_v1 = vadd.f32 %v1611_v21, %v1610_v35 }
 0x219   :  { %v1528_v62 = vmul.f32 %v3305_v61, %v1488_v15  ;;  %v1665_v61 = vsel %vm1664_vm13, %v1563_v7, %v1663_v59  ;;  %v1619_v60 = vadd.f32 %v1618_v16, %v1617_v6  ;;  %v1626_v33 = vadd.f32 %v1625_v4, %v1624_v47 }
 0x21a   :  { %v1581_v13 = vrot.slane %v1580_v41, 2  ;;  %v1667_v20 = vsel %vm1666_vm14, %v1570_v32, %v1665_v61  ;;  %v1672_v3 = vsel %vm1658_vm10, %v1598_v8, %v1591_v30  ;;  %v1633_v36 = vadd.f32 %v1632_v5, %v1631_v26 }
 0x21b   :  { %v1634_v43 = vsel %vm79_vm0, %v1528_v62, 0.0  ;;  %v1669_v55 = vsel %vm1668_vm15, %v1577_v50, %v1667_v20  ;;  %v1673_v56 = vsel %vm1660_vm11, %v1605_v31, %v1672_v3  ;;  %v2256_v42 = vmov 32.0   ;;  %v2083_v3 = vld [vmem:[%s3489_s6 + $0x4] ss:$0 sm:$0xff] }
 0x21c   :  { %v1582_v12 = vadd.f32 %v1581_v13, %v1580_v41  ;;  %v1635_v37 = vrot.slane %v1634_v43, 4  ;;  %v1674_v52 = vsel %vm1662_vm12, %v1612_v1, %v1673_v56  ;;  %2181 = vrcp.f32 %v2256_v42 }
 0x21d   :  { %v1675_v40 = vsel %vm1664_vm13, %v1619_v60, %v1674_v52  ;;  %v2069_v7 = vpack.i.bf16 %v2196_v18, %v2195_v45  ;;  %v2074_v0 = vpack.i.bf16 %v2198_v11, %v2197_v28  ;;  %v2084_v52 = vld [vmem:[%s3489_s6 + $0x5] ss:$0 sm:$0xff] }
 0x21e   :  { %v1583_v14 = vrot.slane %v1582_v12, 1  ;;  %v1636_v29 = vadd.f32 %v1635_v37, %v1634_v43  ;;  %v1676_v23 = vsel %vm1666_vm14, %v1626_v33, %v1675_v40 }
 0x21f   :  { %v1677_v10 = vsel %vm1668_vm15, %v1633_v36, %v1676_v23 }
 0x220   :  { %v1584_v63 = vadd.f32 %v1583_v14, %v1582_v12  ;;  %v1637_v49 = vrot.slane %v1636_v29, 2 }
 0x222   :  { %v1671_v51 = vsel %vm1670_vm2, %v1584_v63, %v1669_v55  ;;  %v1638_v22 = vadd.f32 %v1637_v49, %v1636_v29  ;;  %v2182_v15 = vpop.eup %2181 }
 0x223   :  { %1992 = vmatmul.msk.f32.vlgmr.msra.gmra.mxu1 %vm79_vm0, %v1671_v51  ;;  %v1731_v41 = vmul.f32 32.0, %v2182_v15  ;;  %vm1735_vm3 = vweird.f32 %v2182_v15 }
 0x224   :  { %v1639_v25 = vrot.slane %v1638_v22, 1 }
 0x225   :  { %v1732_v13 = vsub.f32 1.0, %v1731_v41 }
 0x226   :  { %v1640_v27 = vadd.f32 %v1639_v25, %v1638_v22 }
 0x227   :  { %v1733_v62 = vmul.f32 %v2182_v15, %v1732_v13 }
 0x228   :  { %v1678_v58 = vsel %vm1670_vm2, %v1640_v27, %v1677_v10 }
 0x229   :  { %v1734_v2 = vadd.f32 %v2182_v15, %v1733_v62 }
 0x22b   :  { %1993 = vmatmul.msk.f32.gmra.mxu1 %vm79_vm0, %v1678_v58  ;;  %v1736_v35 = vsel %vm1735_vm3, %v2182_v15, %v1734_v2 }
 0x2a0   :  { %v1716_v46 = vpop.f32.mrf.mxu1 }
 0x2a1   :  { %v1717_v9 = vadd.f32 %v2082_v53, %v1716_v46 }
 0x2a3   :  { %v3382_v19 = vadd.f32 %v2193_v57, %v1717_v9 }
 0x2a5   :  { %v1724_v34 = vsel %vm79_vm0, %v3382_v19, 0.0 }
 0x2a6   :  { %1725 = vadd.xlane.f32.xlu0 %v1724_v34 }
 0x2a8   :  { %v1719_v54 = vpop.f32.mrf.mxu1 }
 0x2a9   :  { %v1720_v39 = vadd.f32 %v2082_v53, %v1719_v54 }
 0x2ab   :  { %v3389_v17 = vadd.f32 %v2194_v24, %v1720_v39 }
 0x2ad   :  { %v1727_v59 = vsel %vm79_vm0, %v3389_v17, 0.0 }
 0x2ae   :  { %1728 = vadd.xlane.f32.xlu1 %v1727_v59 }
 0x2ba   :  { %2070 = vrot.lane.b32.xlu0 %v2069_v7, %s2257_s25 }
 0x2c7   :  { %2075 = vrot.lane.b32.xlu1 %v2074_v0, %s2257_s25 }
 0x319   :  { %v1726_v32 = vpop.xlane.xlu0 %1725 }
 0x31a   :  { %v1737_v6 = vmul.f32 %v1736_v35, %v1726_v32 }
 0x31c   :  { %v1739_v12 = vsub.f32 %v3382_v19, %v1737_v6 }
 0x31e   :  { %v1741_v38 = vmul.f32 %v1739_v12, %v1739_v12 }
 0x320   :  { %v1743_v47 = vsel %vm79_vm0, %v1741_v38, 0.0 }
 0x321   :  { %1744 = vadd.xlane.f32.xlu2 %v1743_v47  ;;  %v1729_v43 = vpop.xlane.xlu1 %1728 }
 0x322   :  { %v1738_v50 = vmul.f32 %v1736_v35, %v1729_v43 }
 0x324   :  { %v1740_v48 = vsub.f32 %v3389_v17, %v1738_v50 }
 0x326   :  { %v1742_v26 = vmul.f32 %v1740_v48, %v1740_v48 }
 0x328   :  { %v1746_v37 = vsel %vm79_vm0, %v1742_v26, 0.0 }
 0x329   :  { %1747 = vadd.xlane.f32.xlu2 %v1746_v37 }
 0x32c   :  { %v2071_v14 = vpop.permute.xlu0 %2070 }
 0x32d   :  { %v2073_v44 = vunpack.i.h.bf16 %v2071_v14  ;;  %v2072_v21 = vunpack.i.l.bf16 %v2071_v14 }
 0x32f   :  { %1811 = vmatpush.msrb.mxu0 %v2072_v21 }
 0x331   :  { %1812 = vmatpush.msrb.mxu0 %v2073_v44  ;;  %v70_v44 = vld [vmem:[%s3487_s4 + $0x78] sm:$0xff] }
 0x332   :  { %1924 = vmatpush.msrb.mxu1 %v70_v44 }
 0x339   :  { %v2076_v61 = vpop.permute.xlu1 %2075 }
 0x33a   :  { %v2078_v16 = vunpack.i.h.bf16 %v2076_v61  ;;  %v2077_v29 = vunpack.i.l.bf16 %v2076_v61 }
 0x33c   :  { %1813 = vmatpush.msrb.mxu0 %v2077_v29  ;;  %v69_v29 = vld [vmem:[%s3487_s4 + $0x68] sm:$0xff] }
 0x33d   :  { %1925 = vmatpush.msrb.mxu1 %v69_v29 }
 0x33e   :  { %1814 = vmatpush.msrb.mxu0 %v2078_v16 }
 0x394   :  { %v1745_v63 = vpop.xlane.xlu2 %1744 }
 0x395   :  { %v1749_v20 = vmul.f32 %v1745_v63, %v1736_v35 }
 0x397   :  { %v1751_v8 = vadd.f32 1e-05, %v1749_v20 }
 0x399   :  { %2183 = vrsqrt.f32 %v1751_v8  ;;  %vm1759_vm5 = vweird.f32 %v1751_v8 }
 0x39c   :  { %v1748_v4 = vpop.xlane.xlu2 %1747 }
 0x39d   :  { %v1750_v55 = vmul.f32 %v1748_v4, %v1736_v35  ;;  %v68_v4 = vld [vmem:[%s3487_s4 + $0x58] sm:$0xff] }
 0x39e   :  { %1926 = vmatpush.msrb.mxu1 %v68_v4 }
 0x39f   :  { %v2184_v31 = vpop.eup %2183  ;;  %v1752_v5 = vadd.f32 1e-05, %v1750_v55 }
 0x3a0   :  { %v1754_v49 = vmul.f32 %v2184_v31, %v1751_v8  ;;  %vm1760_vm4 = vweird.f32 %v2184_v31 }
 0x3a1   :  { %2185 = vrsqrt.f32 %v1752_v5  ;;  %vm1761_vm6 = vmor %vm1759_vm5, %vm1760_vm4  ;;  %vm1769_vm8 = vweird.f32 %v1752_v5 }
 0x3a2   :  { %v1755_v51 = vmul.f32 %v2184_v31, %v1754_v49  ;;  %v66_v49 = vld [vmem:[%s3487_s4 + $0x38] sm:$0xff] }
 0x3a4   :  { %v1756_v30 = vmul.f32 0.5, %v1755_v51 }
 0x3a6   :  { %v1757_v1 = vsub.f32 1.5, %v1756_v30 }
 0x3a7   :  { %v2186_v60 = vpop.eup %2185 }
 0x3a8   :  { %v1758_v22 = vmul.f32 %v2184_v31, %v1757_v1  ;;  %v1764_v33 = vmul.f32 %v2186_v60, %v1752_v5  ;;  %vm1770_vm7 = vweird.f32 %v2186_v60  ;;  %v65_v1 = vld [vmem:[%s3487_s4 + $0x28] sm:$0xff] }
 0x3a9   :  { %vm1771_vm9 = vmor %vm1769_vm8, %vm1770_vm7 }
 0x3aa   :  { %v1762_v36 = vsel %vm1761_vm6, %v2184_v31, %v1758_v22  ;;  %v1765_v25 = vmul.f32 %v2186_v60, %v1764_v33  ;;  %v67_v31 = vld [vmem:[%s3487_s4 + $0x48] sm:$0xff]  ;;  %v64_v33 = vld [vmem:[%s3487_s4 + $0x18] sm:$0xff] }
 0x3ab   :  { %v1773_v56 = vmul.f32 %v1762_v36, %v1739_v12  ;;  %1927 = vmatpush.msrb.mxu1 %v67_v31 }
 0x3ac   :  { %v1766_v27 = vmul.f32 0.5, %v1765_v25 }
 0x3ad   :  { %v1776_v40 = vmul.f32 %v2083_v3, %v1773_v56  ;;  %1928 = vmatpush.msrb.mxu1 %v66_v49 }
 0x3ae   :  { %v1767_v23 = vsub.f32 1.5, %v1766_v27 }
 0x3af   :  { %v1779_v10 = vadd.f32 %v2084_v52, %v1776_v40  ;;  %1929 = vmatpush.msrb.mxu1 %v65_v1 }
 0x3b0   :  { %v1768_v58 = vmul.f32 %v2186_v60, %v1767_v23 }
 0x3b1   :  { %1994 = vmatmul.msk.f32.vlgmr.msrb.gmra.mxu0 %vm79_vm0, %v1779_v10  ;;  %1930 = vmatpush.msrb.mxu1 %v64_v33 }
 0x3b2   :  { %v1772_v53 = vsel %vm1771_vm9, %v2186_v60, %v1768_v58 }
 0x3b3   :  { %v1774_v46 = vmul.f32 %v1772_v53, %v1740_v48 }
 0x3b5   :  { %v1777_v9 = vmul.f32 %v2083_v3, %v1774_v46 }
 0x3b7   :  { %v1780_v57 = vadd.f32 %v2084_v52, %v1777_v9  ;;  %v63_v52 = vld [vmem:[%s3487_s4 + $0x8] sm:$0xff]  ;;  %s2258_s4 = smov [#allocation5]  }
 0x3b8   :  { %1931 = vmatpush.msrb.mxu1 %v63_v52  ;;  %s1947_s20 = sshll.u32 %s2258_s4, 4  ;;  %s1948_s20 = int_to_ptr.vmem [resolvable:$true] %s1947_s20 }
 0x3b9   :  { %1995 = vmatmul.msk.f32.gmra.mxu0 %vm79_vm0, %v1780_v57 }
 0x42e   :  { %v3417_v34 = vpop.f32.mrf.mxu0 }
 0x42f   :  { %v3420_v54 = vmul.f32 0.70710677, %v3417_v34 }
 0x431   :  { %v1826_v39 = vmul.f32 %v3420_v54, %v3420_v54 }
 0x433   :  { %v1827_v24 = vmin.f32 %v1826_v39, 16.0 }
 0x435   :  { %v1828_v59 = vmul.f32 2.1237322e-06, %v1827_v24  ;;  %v1839_v42 = vmul.f32 3.8918573e-05, %v1827_v24 }
 0x436   :  { %v3424_v15 = vpop.f32.mrf.mxu0 }
 0x437   :  { %v1829_v41 = vadd.f32 0.00028619796, %v1828_v59  ;;  %v1840_v45 = vadd.f32 0.001143296, %v1839_v42  ;;  %v3427_v18 = vmul.f32 0.70710677, %v3424_v15 }
 0x439   :  { %v1830_v7 = vmul.f32 %v1829_v41, %v1827_v24  ;;  %v1841_v28 = vmul.f32 %v1840_v45, %v1827_v24  ;;  %v1866_v11 = vmul.f32 %v3427_v18, %v3427_v18 }
 0x43b   :  { %v1842_v0 = vadd.f32 0.014752088, %v1841_v28  ;;  %v1831_v13 = vadd.f32 0.0036580483, %v1830_v7  ;;  %v3431_v62 = vmin.f32 %v1866_v11, 16.0 }
 0x43d   :  { %v1843_v2 = vmul.f32 %v1842_v0, %v1827_v24  ;;  %v1868_v35 = vmul.f32 2.1237322e-06, %v3431_v62  ;;  %v1879_v32 = vmul.f32 3.8918573e-05, %v3431_v62  ;;  %v1832_v12 = vmul.f32 %v1831_v13, %v1827_v24 }
 0x43f   :  { %v1844_v6 = vadd.f32 0.112945676, %v1843_v2  ;;  %v1869_v38 = vadd.f32 0.00028619796, %v1868_v35  ;;  %v1880_v47 = vadd.f32 0.001143296, %v1879_v32 }
 0x440   :  { %v1833_v37 = vadd.f32 0.05243302, %v1832_v12  ;;  %v1822_v32 = vmul.f32 0.5, %v3417_v34 }
 0x441   :  { %v1845_v43 = vmul.f32 %v1844_v6, %v1827_v24  ;;  %v1870_v50 = vmul.f32 %v1869_v38, %v3431_v62  ;;  %v1881_v48 = vmul.f32 %v1880_v47, %v3431_v62 }
 0x442   :  { %v1834_v20 = vmul.f32 %v1833_v37, %v1827_v24 }
 0x443   :  { %v1846_v26 = vadd.f32 0.4994258, %v1845_v43  ;;  %v1882_v14 = vadd.f32 0.014752088, %v1881_v48  ;;  %v1871_v61 = vadd.f32 0.0036580483, %v1870_v50 }
 0x444   :  { %v1835_v51 = vadd.f32 0.18741608, %v1834_v20 }
 0x445   :  { %v1847_v21 = vmul.f32 %v1846_v26, %v1827_v24  ;;  %v1883_v16 = vmul.f32 %v1882_v14, %v3431_v62  ;;  %v1872_v55 = vmul.f32 %v1871_v61, %v3431_v62  ;;  %v1823_v26 = vmul.f32 0.5, %v3424_v15 }
 0x446   :  { %v1836_v36 = vmul.f32 %v1835_v51, %v1827_v24 }
 0x447   :  { %v1848_v63 = vadd.f32 1.0, %v1847_v21  ;;  %v1884_v8 = vadd.f32 0.112945676, %v1883_v16  ;;  %v1873_v60 = vadd.f32 0.05243302, %v1872_v55 }
 0x448   :  { %v1837_v10 = vadd.f32 1.1283791, %v1836_v36 }
 0x449   :  { %2187 = vrcp.f32 %v1848_v63  ;;  %v1885_v5 = vmul.f32 %v1884_v8, %v3431_v62  ;;  %v1874_v27 = vmul.f32 %v1873_v60, %v3431_v62  ;;  %v1860_v23 = vand.u32 2147483648, %v1848_v63 }
 0x44a   :  { %v1858_v53 = vand.u32 2147483647, %v1848_v63  ;;  %vm1854_vm11 = vweird.f32 %v1848_v63  ;;  %v1838_v24 = vmul.f32 %v1837_v10, %v3420_v54 }
 0x44b   :  { %v1886_v30 = vadd.f32 0.4994258, %v1885_v5  ;;  %v1875_v46 = vadd.f32 0.18741608, %v1874_v27  ;;  %v1861_v57 = vor.u32 1.1754944e-38, %v1860_v23 }
 0x44c   :  { %vm1859_vm13 = vcmp.eq.f32.partialorder %v1858_v53, 8.507059e+37 }
 0x44d   :  { %v1887_v22 = vmul.f32 %v1886_v30, %v3431_v62  ;;  %v1876_v41 = vmul.f32 %v1875_v46, %v3431_v62 }
 0x44f   :  { %v2188_v3 = vpop.eup %2187  ;;  %v1888_v56 = vadd.f32 1.0, %v1887_v22  ;;  %v1877_v13 = vadd.f32 1.1283791, %v1876_v41 }
 0x450   :  { %v1850_v25 = vmul.f32 %v2188_v3, %v1848_v63  ;;  %vm1855_vm10 = vweird.f32 %v2188_v3 }
 0x451   :  { %2189 = vrcp.f32 %v1888_v56  ;;  %vm1856_vm12 = vmor %vm1854_vm11, %vm1855_vm10  ;;  %v1900_v0 = vand.u32 2147483648, %v1888_v56  ;;  %v1898_v35 = vand.u32 2147483647, %v1888_v56  ;;  %vm1894_vm15 = vweird.f32 %v1888_v56 }
 0x452   :  { %v1851_v40 = vsub.f32 1.0, %v1850_v25  ;;  %v1878_v47 = vmul.f32 %v1877_v13, %v3427_v18 }
 0x453   :  { %v1901_v38 = vor.u32 1.1754944e-38, %v1900_v0  ;;  %vm1899_vm3 = vcmp.eq.f32.partialorder %v1898_v35, 8.507059e+37 }
 0x454   :  { %v1852_v58 = vmul.f32 %v2188_v3, %v1851_v40 }
 0x456   :  { %v1853_v9 = vadd.f32 %v2188_v3, %v1852_v58 }
 0x457   :  { %v2190_v39 = vpop.eup %2189 }
 0x458   :  { %v1857_v59 = vsel %vm1856_vm12, %v2188_v3, %v1853_v9  ;;  %v1890_v45 = vmul.f32 %v2190_v39, %v1888_v56  ;;  %vm1895_vm14 = vweird.f32 %v2190_v39 }
 0x459   :  { %v1862_v42 = vsel %vm1859_vm13, %v1861_v57, %v1857_v59  ;;  %vm1896_vm2 = vmor %vm1894_vm15, %vm1895_vm14 }
 0x45a   :  { %v1863_v7 = vmul.f32 %v1862_v42, %v1838_v24  ;;  %v1891_v28 = vsub.f32 1.0, %v1890_v45 }
 0x45c   :  { %v1996_v11 = vclamps-f32 %v1863_v7, 1.0  ;;  %v1892_v2 = vmul.f32 %v2190_v39, %v1891_v28 }
 0x45e   :  { %v1906_v6 = vadd.f32 1.0, %v1996_v11  ;;  %v1893_v12 = vadd.f32 %v2190_v39, %v1892_v2 }
 0x460   :  { %v1908_v54 = vmul.f32 %v1906_v6, %v1822_v32  ;;  %v1897_v62 = vsel %vm1896_vm2, %v2190_v39, %v1893_v12 }
 0x461   :  { %v1902_v43 = vsel %vm1899_vm3, %v1901_v38, %v1897_v62 }
 0x462   :  { %1998 = vmatmul.msk.f32.vlgmr.msrb.gmra.mxu1 %vm141_vm1, %v1908_v54  ;;  %v1903_v50 = vmul.f32 %v1902_v43, %v1878_v47 }
 0x464   :  { %v1997_v48 = vclamps-f32 %v1903_v50, 1.0 }
 0x466   :  { %v1907_v37 = vadd.f32 1.0, %v1997_v48 }
 0x468   :  { %v1909_v14 = vmul.f32 %v1907_v37, %v1823_v26 }
 0x46a   :  { %1999 = vmatmul.msk.f32.gmra.mxu1 %vm141_vm1, %v1909_v14 }
 0x4df   :  { %v1933_v34 = vpop.f32.mrf.mxu1 }
 0x4e0   :  { %v1939_v44 = vadd.f32 %v1933_v34, %v3382_v19 }
 0x4e2   :  { %1941 = vst.msk [vmem:[#allocation5] sm:$0xff] %vm79_vm0, %v1939_v44 }
 0x4e7   :  { %v1936_v18 = vpop.f32.mrf.mxu1 }
 0x4e8   :  { %v1940_v21 = vadd.f32 %v1936_v18, %v3389_v17 }
 0x4ea   :  { %1942 = vst.msk [vmem:[#allocation5 + $0x8] sm:$0xff] %vm79_vm0, %v1940_v21 }
 0x4eb   :  { %1955 = dma.vmem_to_hbm [thread:$0]  %s1948_s20, 256, %s1950_s22, [#allocation4], %s2252_s29, %s2252_s29, %s2253_s30  }
 0x4ec   :  { %2249 = dma.done.wait [#allocation4], 256  }
 0x4ed   :  { %2250 = vsyncadd [#allocation4], 4294967040 }
 0x4ee   :  { %1960 = vsyncpa [#allocation3], 1 }
 0x4ef   :  { %1961 = vsyncpa [#allocation4], 1 }

</bundles_post_ra>
